<compile_context>
chip_gen: v6e
topology: v6e:2x2x1
jax: 0.10.0
libtpu: 0.0.40
codegen_flags: <defaults>
</compile_context>

<pallas_src>
import jax
import jax.numpy as jnp
from jax import lax
from jax.experimental import pallas as pl
from jax.experimental.pallas import tpu as pltpu


def _relu_groupconv_kernel(p_ref, w_ref, o_ref):
    # p_ref: (Gpb, Cg*KH*KW, H*W)  im2col patches for the groups handled by this block
    # w_ref: (Gpb, Cout_g, Cg*KH*KW)
    # o_ref: (Gpb, Cout_g, H*W)
    gpb = p_ref.shape[0]
    for g in range(gpb):                          # static unroll; one MXU matmul per group
        p = jnp.maximum(p_ref[g], 0.0)            # fused ReLU on a lane-dense (K, HW) slab
        o = jnp.dot(w_ref[g], p, preferred_element_type=jnp.float32)
        o_ref[g] = o.astype(o_ref.dtype)


def relu_grouped_conv2d(x, weight, *, groups):
    """x: (1, C, H, W) NCHW, weight: (Cout, Cin//groups, KH, KW)."""
    N, C, H, W = x.shape
    Cout, Cg, KH, KW = weight.shape
    assert N == 1 and C % groups == 0 and Cout % groups == 0 and C // groups == Cg
    Cout_g = Cout // groups
    ph, pw = KH // 2, KW // 2
    Hp, Wp = H + 2 * ph, W + 2 * pw
    HW = H * W
    K = Cg * KH * KW

    # ---- wrapper glue: zero pad + im2col (pure layout; ReLU stays in the kernel) ----
    x_pad = jnp.pad(x, ((0, 0), (0, 0), (ph, ph), (pw, pw)))
    x_g = x_pad.reshape(groups, Cg, Hp, Wp)
    # tap index = kh*KW + kw; flattened contraction index = cg*(KH*KW) + tap
    taps = [x_g[:, :, kh:kh + H, kw:kw + W].reshape(groups, Cg, HW)
            for kh in range(KH) for kw in range(KW)]
    patches = jnp.stack(taps, axis=2).reshape(groups, K, HW)        # (G, 216, 196)
    w_flat = weight.reshape(groups, Cout_g, K)                      # (G, 24, 216)

    # One grid step; two if the group count is even so v7x's two TensorCores split the work.
    n_blocks = 2 if groups % 2 == 0 else 1
    gpb = groups // n_blocks

    out = pl.pallas_call(
        _relu_groupconv_kernel,
        out_shape=jax.ShapeDtypeStruct((groups, Cout_g, HW), x.dtype),
        grid_spec=pltpu.PrefetchScalarGridSpec(
            num_scalar_prefetch=0,
            grid=(n_blocks,),
            in_specs=[
                pl.BlockSpec((gpb, K, HW), lambda i: (i, 0, 0)),
                pl.BlockSpec((gpb, Cout_g, K), lambda i: (i, 0, 0)),
            ],
            out_specs=pl.BlockSpec((gpb, Cout_g, HW), lambda i: (i, 0, 0)),
        ),
        compiler_params=pltpu.CompilerParams(dimension_semantics=("parallel",)),
    )(patches, w_flat)

    return out.reshape(1, Cout, H, W)


def _reference(x, weight, *, groups):
    x = jnp.maximum(x, 0.0)
    return lax.conv_general_dilated(
        x, weight, window_strides=(1, 1), padding=((1, 1), (1, 1)),
        dimension_numbers=("NCHW", "OIHW", "NCHW"),
        feature_group_count=groups,
    )


if __name__ == "__main__":
    key = jax.random.PRNGKey(0)
    kx, kw = jax.random.split(key)

    GROUPS = 14
    C = 336                      # channels fixed by the module definition
    H = W = 14
    x = jax.random.normal(kx, (1, C, H, W), dtype=jnp.float32)
    weight = jax.random.normal(kw, (C, C // GROUPS, 3, 3), dtype=jnp.float32) * 0.05

    out = relu_grouped_conv2d(x, weight, groups=GROUPS)
    out = jax.block_until_ready(out)

    ref = _reference(x, weight, groups=GROUPS)
    assert out.shape == (1, C, H, W)
    assert jnp.allclose(out, ref, atol=1e-4, rtol=1e-4)

    print("KERNEL_OK")
</pallas_src>

<mosaic_0001>
module attributes {stable_mosaic.version = 11 : i64} {
  func.func @_relu_groupconv_kernel(%arg0: i32, %arg1: memref<7x216x196xf32, #tpu.memory_space<vmem>>, %arg2: memref<7x24x216xf32, #tpu.memory_space<vmem>>, %arg3: memref<7x24x196xf32, #tpu.memory_space<vmem>>) attributes {dimension_semantics = [#tpu.dimension_semantics<parallel>], iteration_bounds = array<i64: 2>, scalar_prefetch = 0 : i64, scratch_operands = 0 : i64, tpu.core_type = #tpu.core_type<tc>, window_params = [{transform_indices = @transform_0, window_bounds = array<i64: 7, 216, 196>}, {transform_indices = @transform_1, window_bounds = array<i64: 7, 24, 216>}, {transform_indices = @transform_2, window_bounds = array<i64: 7, 24, 196>}]} {
    %c0 = arith.constant 0 : index
    %c0_0 = arith.constant 0 : index
    %c0_1 = arith.constant 0 : index
    %0 = vector.load %arg1[%c0, %c0_0, %c0_1] : memref<7x216x196xf32, #tpu.memory_space<vmem>>, vector<1x216x196xf32>
    %1 = vector.shape_cast %0 : vector<1x216x196xf32> to vector<216x196xf32>
    %cst = arith.constant 0.000000e+00 : f32
    %2 = vector.broadcast %cst : f32 to vector<216x196xf32>
    %3 = arith.maximumf %1, %2 : vector<216x196xf32>
    %c0_2 = arith.constant 0 : index
    %c0_3 = arith.constant 0 : index
    %c0_4 = arith.constant 0 : index
    %4 = vector.load %arg2[%c0_2, %c0_3, %c0_4] : memref<7x24x216xf32, #tpu.memory_space<vmem>>, vector<1x24x216xf32>
    %5 = vector.shape_cast %4 : vector<1x24x216xf32> to vector<24x216xf32>
    %cst_5 = arith.constant dense<0.000000e+00> : vector<24x196xf32>
    %6 = tpu.matmul %5, %3, %cst_5 {dimension_numbers = #tpu.dot_dimension_numbers<[1], [0], [0], [1], [0, 0, 1, 1], [], []>} : vector<24x216xf32>, vector<216x196xf32>, vector<24x196xf32> -> vector<24x196xf32>
    %c0_6 = arith.constant 0 : index
    %c0_7 = arith.constant 0 : index
    %c0_8 = arith.constant 0 : index
    %7 = vector.load %arg3[%c0_6, %c0_7, %c0_8] : memref<7x24x196xf32, #tpu.memory_space<vmem>>, vector<1x24x196xf32>
    %8 = vector.shape_cast %7 : vector<1x24x196xf32> to vector<24x196xf32>
    %9 = vector.shape_cast %6 : vector<24x196xf32> to vector<1x24x196xf32>
    tpu.vector_store %arg3[%c0_6, %c0_7, %c0_8], %9 {strides = array<i32>} : memref<7x24x196xf32, #tpu.memory_space<vmem>>, vector<1x24x196xf32>,
    %c1 = arith.constant 1 : index
    %c0_9 = arith.constant 0 : index
    %c0_10 = arith.constant 0 : index
    %10 = vector.load %arg1[%c1, %c0_9, %c0_10] : memref<7x216x196xf32, #tpu.memory_space<vmem>>, vector<1x216x196xf32>
    %11 = vector.shape_cast %10 : vector<1x216x196xf32> to vector<216x196xf32>
    %cst_11 = arith.constant 0.000000e+00 : f32
    %12 = vector.broadcast %cst_11 : f32 to vector<216x196xf32>
    %13 = arith.maximumf %11, %12 : vector<216x196xf32>
    %c1_12 = arith.constant 1 : index
    %c0_13 = arith.constant 0 : index
    %c0_14 = arith.constant 0 : index
    %14 = vector.load %arg2[%c1_12, %c0_13, %c0_14] : memref<7x24x216xf32, #tpu.memory_space<vmem>>, vector<1x24x216xf32>
    %15 = vector.shape_cast %14 : vector<1x24x216xf32> to vector<24x216xf32>
    %cst_15 = arith.constant dense<0.000000e+00> : vector<24x196xf32>
    %16 = tpu.matmul %15, %13, %cst_15 {dimension_numbers = #tpu.dot_dimension_numbers<[1], [0], [0], [1], [0, 0, 1, 1], [], []>} : vector<24x216xf32>, vector<216x196xf32>, vector<24x196xf32> -> vector<24x196xf32>
    %c1_16 = arith.constant 1 : index
    %c0_17 = arith.constant 0 : index
    %c0_18 = arith.constant 0 : index
    %17 = vector.load %arg3[%c1_16, %c0_17, %c0_18] : memref<7x24x196xf32, #tpu.memory_space<vmem>>, vector<1x24x196xf32>
    %18 = vector.shape_cast %17 : vector<1x24x196xf32> to vector<24x196xf32>
    %19 = vector.shape_cast %16 : vector<24x196xf32> to vector<1x24x196xf32>
    tpu.vector_store %arg3[%c1_16, %c0_17, %c0_18], %19 {strides = array<i32>} : memref<7x24x196xf32, #tpu.memory_space<vmem>>, vector<1x24x196xf32>,
    %c2 = arith.constant 2 : index
    %c0_19 = arith.constant 0 : index
    %c0_20 = arith.constant 0 : index
    %20 = vector.load %arg1[%c2, %c0_19, %c0_20] : memref<7x216x196xf32, #tpu.memory_space<vmem>>, vector<1x216x196xf32>
    %21 = vector.shape_cast %20 : vector<1x216x196xf32> to vector<216x196xf32>
    %cst_21 = arith.constant 0.000000e+00 : f32
    %22 = vector.broadcast %cst_21 : f32 to vector<216x196xf32>
    %23 = arith.maximumf %21, %22 : vector<216x196xf32>
    %c2_22 = arith.constant 2 : index
    %c0_23 = arith.constant 0 : index
    %c0_24 = arith.constant 0 : index
    %24 = vector.load %arg2[%c2_22, %c0_23, %c0_24] : memref<7x24x216xf32, #tpu.memory_space<vmem>>, vector<1x24x216xf32>
    %25 = vector.shape_cast %24 : vector<1x24x216xf32> to vector<24x216xf32>
    %cst_25 = arith.constant dense<0.000000e+00> : vector<24x196xf32>
    %26 = tpu.matmul %25, %23, %cst_25 {dimension_numbers = #tpu.dot_dimension_numbers<[1], [0], [0], [1], [0, 0, 1, 1], [], []>} : vector<24x216xf32>, vector<216x196xf32>, vector<24x196xf32> -> vector<24x196xf32>
    %c2_26 = arith.constant 2 : index
    %c0_27 = arith.constant 0 : index
    %c0_28 = arith.constant 0 : index
    %27 = vector.load %arg3[%c2_26, %c0_27, %c0_28] : memref<7x24x196xf32, #tpu.memory_space<vmem>>, vector<1x24x196xf32>
    %28 = vector.shape_cast %27 : vector<1x24x196xf32> to vector<24x196xf32>
    %29 = vector.shape_cast %26 : vector<24x196xf32> to vector<1x24x196xf32>
    tpu.vector_store %arg3[%c2_26, %c0_27, %c0_28], %29 {strides = array<i32>} : memref<7x24x196xf32, #tpu.memory_space<vmem>>, vector<1x24x196xf32>,
    %c3 = arith.constant 3 : index
    %c0_29 = arith.constant 0 : index
    %c0_30 = arith.constant 0 : index
    %30 = vector.load %arg1[%c3, %c0_29, %c0_30] : memref<7x216x196xf32, #tpu.memory_space<vmem>>, vector<1x216x196xf32>
    %31 = vector.shape_cast %30 : vector<1x216x196xf32> to vector<216x196xf32>
    %cst_31 = arith.constant 0.000000e+00 : f32
    %32 = vector.broadcast %cst_31 : f32 to vector<216x196xf32>
    %33 = arith.maximumf %31, %32 : vector<216x196xf32>
    %c3_32 = arith.constant 3 : index
    %c0_33 = arith.constant 0 : index
    %c0_34 = arith.constant 0 : index
    %34 = vector.load %arg2[%c3_32, %c0_33, %c0_34] : memref<7x24x216xf32, #tpu.memory_space<vmem>>, vector<1x24x216xf32>
    %35 = vector.shape_cast %34 : vector<1x24x216xf32> to vector<24x216xf32>
    %cst_35 = arith.constant dense<0.000000e+00> : vector<24x196xf32>
    %36 = tpu.matmul %35, %33, %cst_35 {dimension_numbers = #tpu.dot_dimension_numbers<[1], [0], [0], [1], [0, 0, 1, 1], [], []>} : vector<24x216xf32>, vector<216x196xf32>, vector<24x196xf32> -> vector<24x196xf32>
    %c3_36 = arith.constant 3 : index
    %c0_37 = arith.constant 0 : index
    %c0_38 = arith.constant 0 : index
    %37 = vector.load %arg3[%c3_36, %c0_37, %c0_38] : memref<7x24x196xf32, #tpu.memory_space<vmem>>, vector<1x24x196xf32>
    %38 = vector.shape_cast %37 : vector<1x24x196xf32> to vector<24x196xf32>
    %39 = vector.shape_cast %36 : vector<24x196xf32> to vector<1x24x196xf32>
    tpu.vector_store %arg3[%c3_36, %c0_37, %c0_38], %39 {strides = array<i32>} : memref<7x24x196xf32, #tpu.memory_space<vmem>>, vector<1x24x196xf32>,
    %c4 = arith.constant 4 : index
    %c0_39 = arith.constant 0 : index
    %c0_40 = arith.constant 0 : index
    %40 = vector.load %arg1[%c4, %c0_39, %c0_40] : memref<7x216x196xf32, #tpu.memory_space<vmem>>, vector<1x216x196xf32>
    %41 = vector.shape_cast %40 : vector<1x216x196xf32> to vector<216x196xf32>
    %cst_41 = arith.constant 0.000000e+00 : f32
    %42 = vector.broadcast %cst_41 : f32 to vector<216x196xf32>
    %43 = arith.maximumf %41, %42 : vector<216x196xf32>
    %c4_42 = arith.constant 4 : index
    %c0_43 = arith.constant 0 : index
    %c0_44 = arith.constant 0 : index
    %44 = vector.load %arg2[%c4_42, %c0_43, %c0_44] : memref<7x24x216xf32, #tpu.memory_space<vmem>>, vector<1x24x216xf32>
    %45 = vector.shape_cast %44 : vector<1x24x216xf32> to vector<24x216xf32>
    %cst_45 = arith.constant dense<0.000000e+00> : vector<24x196xf32>
    %46 = tpu.matmul %45, %43, %cst_45 {dimension_numbers = #tpu.dot_dimension_numbers<[1], [0], [0], [1], [0, 0, 1, 1], [], []>} : vector<24x216xf32>, vector<216x196xf32>, vector<24x196xf32> -> vector<24x196xf32>
    %c4_46 = arith.constant 4 : index
    %c0_47 = arith.constant 0 : index
    %c0_48 = arith.constant 0 : index
    %47 = vector.load %arg3[%c4_46, %c0_47, %c0_48] : memref<7x24x196xf32, #tpu.memory_space<vmem>>, vector<1x24x196xf32>
    %48 = vector.shape_cast %47 : vector<1x24x196xf32> to vector<24x196xf32>
    %49 = vector.shape_cast %46 : vector<24x196xf32> to vector<1x24x196xf32>
    tpu.vector_store %arg3[%c4_46, %c0_47, %c0_48], %49 {strides = array<i32>} : memref<7x24x196xf32, #tpu.memory_space<vmem>>, vector<1x24x196xf32>,
    %c5 = arith.constant 5 : index
    %c0_49 = arith.constant 0 : index
    %c0_50 = arith.constant 0 : index
    %50 = vector.load %arg1[%c5, %c0_49, %c0_50] : memref<7x216x196xf32, #tpu.memory_space<vmem>>, vector<1x216x196xf32>
    %51 = vector.shape_cast %50 : vector<1x216x196xf32> to vector<216x196xf32>
    %cst_51 = arith.constant 0.000000e+00 : f32
    %52 = vector.broadcast %cst_51 : f32 to vector<216x196xf32>
    %53 = arith.maximumf %51, %52 : vector<216x196xf32>
    %c5_52 = arith.constant 5 : index
    %c0_53 = arith.constant 0 : index
    %c0_54 = arith.constant 0 : index
    %54 = vector.load %arg2[%c5_52, %c0_53, %c0_54] : memref<7x24x216xf32, #tpu.memory_space<vmem>>, vector<1x24x216xf32>
    %55 = vector.shape_cast %54 : vector<1x24x216xf32> to vector<24x216xf32>
    %cst_55 = arith.constant dense<0.000000e+00> : vector<24x196xf32>
    %56 = tpu.matmul %55, %53, %cst_55 {dimension_numbers = #tpu.dot_dimension_numbers<[1], [0], [0], [1], [0, 0, 1, 1], [], []>} : vector<24x216xf32>, vector<216x196xf32>, vector<24x196xf32> -> vector<24x196xf32>
    %c5_56 = arith.constant 5 : index
    %c0_57 = arith.constant 0 : index
    %c0_58 = arith.constant 0 : index
    %57 = vector.load %arg3[%c5_56, %c0_57, %c0_58] : memref<7x24x196xf32, #tpu.memory_space<vmem>>, vector<1x24x196xf32>
    %58 = vector.shape_cast %57 : vector<1x24x196xf32> to vector<24x196xf32>
    %59 = vector.shape_cast %56 : vector<24x196xf32> to vector<1x24x196xf32>
    tpu.vector_store %arg3[%c5_56, %c0_57, %c0_58], %59 {strides = array<i32>} : memref<7x24x196xf32, #tpu.memory_space<vmem>>, vector<1x24x196xf32>,
    %c6 = arith.constant 6 : index
    %c0_59 = arith.constant 0 : index
    %c0_60 = arith.constant 0 : index
    %60 = vector.load %arg1[%c6, %c0_59, %c0_60] : memref<7x216x196xf32, #tpu.memory_space<vmem>>, vector<1x216x196xf32>
    %61 = vector.shape_cast %60 : vector<1x216x196xf32> to vector<216x196xf32>
    %cst_61 = arith.constant 0.000000e+00 : f32
    %62 = vector.broadcast %cst_61 : f32 to vector<216x196xf32>
    %63 = arith.maximumf %61, %62 : vector<216x196xf32>
    %c6_62 = arith.constant 6 : index
    %c0_63 = arith.constant 0 : index
    %c0_64 = arith.constant 0 : index
    %64 = vector.load %arg2[%c6_62, %c0_63, %c0_64] : memref<7x24x216xf32, #tpu.memory_space<vmem>>, vector<1x24x216xf32>
    %65 = vector.shape_cast %64 : vector<1x24x216xf32> to vector<24x216xf32>
    %cst_65 = arith.constant dense<0.000000e+00> : vector<24x196xf32>
    %66 = tpu.matmul %65, %63, %cst_65 {dimension_numbers = #tpu.dot_dimension_numbers<[1], [0], [0], [1], [0, 0, 1, 1], [], []>} : vector<24x216xf32>, vector<216x196xf32>, vector<24x196xf32> -> vector<24x196xf32>
    %c6_66 = arith.constant 6 : index
    %c0_67 = arith.constant 0 : index
    %c0_68 = arith.constant 0 : index
    %67 = vector.load %arg3[%c6_66, %c0_67, %c0_68] : memref<7x24x196xf32, #tpu.memory_space<vmem>>, vector<1x24x196xf32>
    %68 = vector.shape_cast %67 : vector<1x24x196xf32> to vector<24x196xf32>
    %69 = vector.shape_cast %66 : vector<24x196xf32> to vector<1x24x196xf32>
    tpu.vector_store %arg3[%c6_66, %c0_67, %c0_68], %69 {strides = array<i32>} : memref<7x24x196xf32, #tpu.memory_space<vmem>>, vector<1x24x196xf32>,
    return
  }
  func.func @transform_0(%arg0: i32) -> (i32, i32, i32) {
    %c0_i32 = arith.constant 0 : i32
    %c0_i32_0 = arith.constant 0 : i32
    %c0_i32_1 = arith.constant 0 : i32
    return %arg0, %c0_i32, %c0_i32_0 : i32, i32, i32
  }
  func.func @transform_1(%arg0: i32) -> (i32, i32, i32) {
    %c0_i32 = arith.constant 0 : i32
    %c0_i32_0 = arith.constant 0 : i32
    %c0_i32_1 = arith.constant 0 : i32
    return %arg0, %c0_i32, %c0_i32_0 : i32, i32, i32
  }
  func.func @transform_2(%arg0: i32) -> (i32, i32, i32) {
    %c0_i32 = arith.constant 0 : i32
    %c0_i32_0 = arith.constant 0 : i32
    %c0_i32_1 = arith.constant 0 : i32
    return %arg0, %c0_i32, %c0_i32_0 : i32, i32, i32
  }
}

</mosaic_0001>

<bundles_post_ra>
// kernel: tpu_custom_call.1
= control target key start
LH: loop header
LB: loop body
LE: loop exit
PB: predicated region body
PF: predicated region fallthrough
CT: control target
= control target key end

     0   :  { %7 = vsyncpa [#allocation3], 0  ;;  %s2995_s0 = inlined_call_operand.vmem [shape: f32[14,216,196], index: 0, kind: input, shape index: {}]   ;;  %s2996_s1 = inlined_call_operand.vmem [shape: f32[14,24,216], index: 1, kind: input, shape index: {}]   ;;  %s2997_s2 = inlined_call_operand.hbm [shape: f32[14,24,196], index: 2, kind: output, shape index: {}]  }
   0x1   :  { %9 = vsyncpa [#allocation3 + $0x1], 0  ;;  %s2372_s9 = smov 0   ;;  %s2374_s10 = smov 0  }
   0x2   :  { %s2376_s11 = smov 0   ;;  %s2378_s12 = smov 0  }
   0x3 LB: > { %s2393_s13 = sadd.s32 4294967295, %s2352_s12   ;;  %s1766_s14 = sadd.s32 4294967294, %s2352_s12   ;;  %s2352_s12 = sphi %s2378_s12, %s3003_s12   ;;  %s2348_s11 = sphi %s2376_s11, %s3002_s11   ;;  %s2344_s10 = sphi %s2374_s10, %s3001_s10   ;;  %s2340_s9 = sphi %s2372_s9, %s3000_s9  }
   0x4   : > { %s2397_s15 = sadd.s32 1, %s2352_s12   ;;  %s74_s16 = sadd.s32 1, %s2348_s11 }
   0x5   : > { %s71_s17 = ssub.s32 %s2352_s12, %s2397_s15  ;;  %p84_p0 = scmp.ne.s32.totalorder %s2348_s11, %s2344_s10 }
   0x6   : > { %p72_p1 = scmp.eq.s32.totalorder %s71_s17, 0  ;;  %p85_p2 = scmp.eq.s32.totalorder %s2393_s13, 1 }
   0x7   : > { %p90_p3 = scmp.ne.s32.totalorder %s2344_s10, %s2340_s9  ;;  %p91_p4 = scmp.eq.s32.totalorder %s1766_s14, 1 }
   0x8   : > { %s2408_s18 = scalar_select %p72_p1, %s2348_s11, %s74_s16  }
   0x9   : > { %p2410_p5 = por %p85_p2, %p84_p0  ;;  %p2414_p6 = por %p91_p4, %p90_p3 }
   0xa   : > { %p1769_p7 = scmp.ge.s32.totalorder %s2352_s12, 1  ;;  %p129_p8 = scmp.lt.s32.totalorder %s2352_s12, 3 }
   0xc   : > { %p130_p9 = pnand %p1769_p7, %p129_p8 }
   0xd   : > { %s158_s21 = smul.u32 (!%p130_p9), 7, %s2393_s13  ;;  %s155_s30 = sand.u32 (!%p130_p9), 1, %s2344_s10  }
   0xe   : > { %133 = sbr.rel (%p130_p9) target bundleno = 473 (0x1d9), region = 28  ;;  %s2354_s17 = smov (!%p130_p9), [#allocation2]  }
   0xf   : > { %p159_p10 = scmp.lt.s32.totalorder (!%p130_p9), %s158_s21, 13  ;;  %s2246_s3 = smul.u32 (!%p130_p9), 336, %s155_s30 }
  0x10   : > { %s2256_s5 = smul.u32 (!%p130_p9), 5376, %s2393_s13  ;;  %s2955_s13 = scalar_lea.sflag (!%p130_p9), [#allocation3], %s155_s30 }
  0x11   : > { %s2879_s4 = scalar_lea.vmem (!%p130_p9), [#allocation2], %s2246_s3 }
  0x12   : > { %s1692_s6 = sshll.u32 (!%p130_p9), %s2879_s4, 4  ;;  %s2944_s14 = scalar_lea.hbm (!%p130_p9), %s2997_s2, %s2256_s5  ;;  %s2946_s6 = int_to_ptr.vmem [resolvable:$true] %s1692_s6 }
  0x13   : > { %s3005_s21 = smov (!%p159_p10, %s158_s21), 13  ;;  %vm287_vm0 = vcmask 719872   ;;  %vm381_vm1 = vcmask 556032   ;;  %s2292_s16 = scalar_lea.vmem %s2946_s6, 5376 }
  0x14   : > { %s2247_s22 = smul.u32 432, %s3005_s21  ;;  %p2293_p11 = scmp.ne.s32.totalorder %s2946_s6, %s2292_s16 }
  0x15   : > { %s2248_s26 = smul.u32 48, %s3005_s21  ;;  %s2296_s21 = sshll.u32 %s2354_s17, 4  ;;  %s2297_s21 = int_to_ptr.vmem [resolvable:$false] %s2296_s21 }
  0x16   : > { %s2427_s25 = scalar_lea.vmem %s2995_s0, %s2247_s22  ;;  %p2294_p12 = pnand %p2293_p11, %p2410_p5 }
  0x17   : > { %v1806_v0 = vld [vmem:[%s2427_s25 + $0x2a8] sm:$0xff]  ;;  %v1805_v1 = vld [vmem:[%s2427_s25 + $0x2a0] sm:$0xff]  ;;  %v204_v2 = vld [vmem:[%s2427_s25 + $0xf8] sm:$0xff]  ;;  %s2539_s29 = scalar_lea.vmem %s2996_s1, %s2248_s26  ;;  %s2298_s22 = scalar_lea.vmem %s2297_s21, 10752 }
  0x18   : > { %v473_v3 = vmax.f32 %v1806_v0, 0.0  ;;  %v472_v4 = vmax.f32 %v1805_v1, 0.0  ;;  %v258_v5 = vmax.f32 %v204_v2, 0.0  ;;  %v1804_v6 = vld [vmem:[%s2427_s25 + $0x298] sm:$0xff]  ;;  %v203_v7 = vld [vmem:[%s2427_s25 + $0xf0] sm:$0xff]  ;;  %v202_v12 = vld [vmem:[%s2427_s25 + $0xe8] sm:$0xff]  ;;  %p2295_p13 = pneg %p2294_p12  ;;  %p2299_p0 = scmp.lt.s32.totalorder %s2946_s6, %s2297_s21 }
  0x19   : > { %v1803_v8 = vld [vmem:[%s2427_s25 + $0x290] sm:$0xff]  ;;  %v471_v9 = vmax.f32 %v1804_v6, 0.0  ;;  %v257_v10 = vmax.f32 %v203_v7, 0.0  ;;  %v1802_v13 = vld [vmem:[%s2427_s25 + $0x288] sm:$0xff]  ;;  %v201_v14 = vld [vmem:[%s2427_s25 + $0xe0] sm:$0xff]  ;;  %v256_v15 = vmax.f32 %v202_v12, 0.0  ;;  %p2300_p1 = scmp.lt.s32.totalorder %s2298_s22, %s2292_s16 }
  0x1a   : > { %v470_v11 = vmax.f32 %v1803_v8, 0.0  ;;  %512 = vmatprep.subr.mxu1 %v473_v3  ;;  %297 = vmatprep.subr.mxu0 %v258_v5  ;;  %v469_v16 = vmax.f32 %v1802_v13, 0.0  ;;  %v255_v17 = vmax.f32 %v201_v14, 0.0  ;;  %v1801_v18 = vld [vmem:[%s2427_s25 + $0x280] sm:$0xff]  ;;  %v200_v19 = vld [vmem:[%s2427_s25 + $0xd8] sm:$0xff]  ;;  %v199_v23 = vld [vmem:[%s2427_s25 + $0xd0] sm:$0xff] }
  0x1b   : > { %v1800_v20 = vld [vmem:[%s2427_s25 + $0x278] sm:$0xff]  ;;  %513 = vmatpush1.msra.mxu1 %v472_v4  ;;  %298 = vmatpush1.msra.mxu0 %v257_v10  ;;  %v468_v21 = vmax.f32 %v1801_v18, 0.0  ;;  %v254_v22 = vmax.f32 %v200_v19, 0.0  ;;  %v1799_v24 = vld [vmem:[%s2427_s25 + $0x270] sm:$0xff]  ;;  %v198_v25 = vld [vmem:[%s2427_s25 + $0xc8] sm:$0xff]  ;;  %v253_v27 = vmax.f32 %v199_v23, 0.0  ;;  %p2301_p2 = por %p2300_p1, %p2299_p0 }
  0x1c   : > { %514 = vmatprep.subr.mxu1 %v471_v9  ;;  %299 = vmatprep.subr.mxu0 %v256_v15  ;;  %v467_v26 = vmax.f32 %v1800_v20, 0.0  ;;  %v252_v28 = vmax.f32 %v198_v25, 0.0  ;;  %v1798_v29 = vld [vmem:[%s2427_s25 + $0x268] sm:$0xff]  ;;  %v197_v30 = vld [vmem:[%s2427_s25 + $0xc0] sm:$0xff]  ;;  %v466_v32 = vmax.f32 %v1799_v24, 0.0  ;;  %v196_v34 = vld [vmem:[%s2427_s25 + $0xb8] sm:$0xff] }
  0x1d   : > { %v1797_v31 = vld [vmem:[%s2427_s25 + $0x260] sm:$0xff]  ;;  %515 = vmatpush1.msra.mxu1 %v470_v11  ;;  %300 = vmatpush1.msra.mxu0 %v255_v17  ;;  %v251_v33 = vmax.f32 %v197_v30, 0.0  ;;  %v1796_v35 = vld [vmem:[%s2427_s25 + $0x258] sm:$0xff]  ;;  %v195_v36 = vld [vmem:[%s2427_s25 + $0xb0] sm:$0xff]  ;;  %v465_v37 = vmax.f32 %v1798_v29, 0.0  ;;  %v250_v38 = vmax.f32 %v196_v34, 0.0  ;;  %p2302_p3 = pnand %p2301_p2, %p2295_p13 }
  0x1e   : > { %516 = vmatprep.subr.mxu1 %v469_v16  ;;  %301 = vmatprep.subr.mxu0 %v254_v22  ;;  %v1795_v39 = vld [vmem:[%s2427_s25 + $0x250] sm:$0xff]  ;;  %v194_v40 = vld [vmem:[%s2427_s25 + $0xa8] sm:$0xff]  ;;  %v464_v41 = vmax.f32 %v1797_v31, 0.0  ;;  %v249_v42 = vmax.f32 %v195_v36, 0.0  ;;  %v193_v44 = vld [vmem:[%s2427_s25 + $0xa0] sm:$0xff]  ;;  %v463_v46 = vmax.f32 %v1796_v35, 0.0 }
  0x1f   : > { %517 = vmatpush1.msra.mxu1 %v468_v21  ;;  %302 = vmatpush1.msra.mxu0 %v253_v27  ;;  %v1794_v43 = vld [vmem:[%s2427_s25 + $0x248] sm:$0xff]  ;;  %v192_v45 = vld [vmem:[%s2427_s25 + $0x98] sm:$0xff]  ;;  %v248_v47 = vmax.f32 %v194_v40, 0.0  ;;  %v1793_v48 = vld [vmem:[%s2427_s25 + $0x240] sm:$0xff]  ;;  %v462_v50 = vmax.f32 %v1795_v39, 0.0  ;;  %v247_v51 = vmax.f32 %v193_v44, 0.0 }
  0x20   : > { %518 = vmatprep.subr.mxu1 %v467_v26  ;;  %303 = vmatprep.subr.mxu0 %v252_v28  ;;  %v191_v49 = vld [vmem:[%s2427_s25 + $0x90] sm:$0xff]  ;;  %v1792_v52 = vld [vmem:[%s2427_s25 + $0x238] sm:$0xff]  ;;  %v190_v53 = vld [vmem:[%s2427_s25 + $0x88] sm:$0xff]  ;;  %v461_v54 = vmax.f32 %v1794_v43, 0.0  ;;  %v246_v55 = vmax.f32 %v192_v45, 0.0  ;;  %v460_v58 = vmax.f32 %v1793_v48, 0.0 }
  0x21   : > { %519 = vmatpush1.msra.mxu1 %v466_v32  ;;  %304 = vmatpush1.msra.mxu0 %v251_v33  ;;  %v1791_v56 = vld [vmem:[%s2427_s25 + $0x230] sm:$0xff]  ;;  %v189_v57 = vld [vmem:[%s2427_s25 + $0x80] sm:$0xff]  ;;  %v245_v59 = vmax.f32 %v191_v49, 0.0  ;;  %v1790_v60 = vld [vmem:[%s2427_s25 + $0x228] sm:$0xff]  ;;  %v459_v62 = vmax.f32 %v1792_v52, 0.0  ;;  %v244_v63 = vmax.f32 %v190_v53, 0.0 }
  0x22   : > { %520 = vmatprep.subr.mxu1 %v465_v37  ;;  %305 = vmatprep.subr.mxu0 %v250_v38  ;;  %v188_v61 = vld [vmem:[%s2427_s25 + $0x78] sm:$0xff]  ;;  %v1789_v0 = vld [vmem:[%s2427_s25 + $0x220] sm:$0xff]  ;;  %v187_v1 = vld [vmem:[%s2427_s25 + $0x70] sm:$0xff]  ;;  %v458_v2 = vmax.f32 %v1791_v56, 0.0  ;;  %v243_v3 = vmax.f32 %v189_v57, 0.0  ;;  %v457_v6 = vmax.f32 %v1790_v60, 0.0 }
  0x23   : > { %521 = vmatpush1.msra.mxu1 %v464_v41  ;;  %306 = vmatpush1.msra.mxu0 %v249_v42  ;;  %v1788_v4 = vld [vmem:[%s2427_s25 + $0x218] sm:$0xff]  ;;  %v186_v5 = vld [vmem:[%s2427_s25 + $0x68] sm:$0xff]  ;;  %v242_v7 = vmax.f32 %v188_v61, 0.0  ;;  %v1787_v8 = vld [vmem:[%s2427_s25 + $0x210] sm:$0xff]  ;;  %v456_v10 = vmax.f32 %v1789_v0, 0.0  ;;  %v241_v11 = vmax.f32 %v187_v1, 0.0 }
  0x24   : > { %522 = vmatprep.subr.mxu1 %v463_v46  ;;  %307 = vmatprep.subr.mxu0 %v248_v47  ;;  %v185_v9 = vld [vmem:[%s2427_s25 + $0x60] sm:$0xff]  ;;  %v1786_v12 = vld [vmem:[%s2427_s25 + $0x208] sm:$0xff]  ;;  %v184_v13 = vld [vmem:[%s2427_s25 + $0x58] sm:$0xff]  ;;  %v455_v14 = vmax.f32 %v1788_v4, 0.0  ;;  %v240_v15 = vmax.f32 %v186_v5, 0.0  ;;  %v454_v18 = vmax.f32 %v1787_v8, 0.0 }
  0x25   : > { %523 = vmatpush1.msra.mxu1 %v462_v50  ;;  %308 = vmatpush1.msra.mxu0 %v247_v51  ;;  %v1785_v16 = vld [vmem:[%s2427_s25 + $0x200] sm:$0xff]  ;;  %v183_v17 = vld [vmem:[%s2427_s25 + $0x50] sm:$0xff]  ;;  %v239_v19 = vmax.f32 %v185_v9, 0.0  ;;  %v1784_v20 = vld [vmem:[%s2427_s25 + $0x1f8] sm:$0xff]  ;;  %v453_v22 = vmax.f32 %v1786_v12, 0.0  ;;  %v238_v23 = vmax.f32 %v184_v13, 0.0 }
  0x26   : > { %524 = vmatprep.subr.mxu1 %v461_v54  ;;  %309 = vmatprep.subr.mxu0 %v246_v55  ;;  %v182_v21 = vld [vmem:[%s2427_s25 + $0x48] sm:$0xff]  ;;  %v1783_v24 = vld [vmem:[%s2427_s25 + $0x1f0] sm:$0xff]  ;;  %v181_v25 = vld [vmem:[%s2427_s25 + $0x40] sm:$0xff]  ;;  %v452_v26 = vmax.f32 %v1785_v16, 0.0  ;;  %v237_v27 = vmax.f32 %v183_v17, 0.0  ;;  %v451_v30 = vmax.f32 %v1784_v20, 0.0 }
  0x27   : > { %525 = vmatpush1.msra.mxu1 %v460_v58  ;;  %310 = vmatpush1.msra.mxu0 %v245_v59  ;;  %v1782_v28 = vld [vmem:[%s2427_s25 + $0x1e8] sm:$0xff]  ;;  %v180_v29 = vld [vmem:[%s2427_s25 + $0x38] sm:$0xff]  ;;  %v236_v31 = vmax.f32 %v182_v21, 0.0  ;;  %v1781_v32 = vld [vmem:[%s2427_s25 + $0x1e0] sm:$0xff]  ;;  %v450_v34 = vmax.f32 %v1783_v24, 0.0  ;;  %v235_v35 = vmax.f32 %v181_v25, 0.0 }
  0x28   : > { %526 = vmatprep.subr.mxu1 %v459_v62  ;;  %311 = vmatprep.subr.mxu0 %v244_v63  ;;  %v179_v33 = vld [vmem:[%s2427_s25 + $0x30] sm:$0xff]  ;;  %v1780_v36 = vld [vmem:[%s2427_s25 + $0x1d8] sm:$0xff]  ;;  %v178_v37 = vld [vmem:[%s2427_s25 + $0x28] sm:$0xff]  ;;  %v449_v38 = vmax.f32 %v1782_v28, 0.0  ;;  %v234_v39 = vmax.f32 %v180_v29, 0.0  ;;  %v448_v42 = vmax.f32 %v1781_v32, 0.0 }
  0x29   : > { %527 = vmatpush1.msra.mxu1 %v458_v2  ;;  %312 = vmatpush1.msra.mxu0 %v243_v3  ;;  %v1779_v40 = vld [vmem:[%s2427_s25 + $0x1d0] sm:$0xff]  ;;  %v177_v41 = vld [vmem:[%s2427_s25 + $0x20] sm:$0xff]  ;;  %v233_v43 = vmax.f32 %v179_v33, 0.0  ;;  %v1778_v44 = vld [vmem:[%s2427_s25 + $0x1c8] sm:$0xff]  ;;  %v447_v46 = vmax.f32 %v1780_v36, 0.0  ;;  %v232_v47 = vmax.f32 %v178_v37, 0.0 }
  0x2a   : > { %528 = vmatprep.subr.mxu1 %v457_v6  ;;  %313 = vmatprep.subr.mxu0 %v242_v7  ;;  %v176_v45 = vld [vmem:[%s2427_s25 + $0x18] sm:$0xff]  ;;  %v1777_v48 = vld [vmem:[%s2427_s25 + $0x1c0] sm:$0xff]  ;;  %v175_v49 = vld [vmem:[%s2427_s25 + $0x10] sm:$0xff]  ;;  %v446_v50 = vmax.f32 %v1779_v40, 0.0  ;;  %v231_v51 = vmax.f32 %v177_v41, 0.0  ;;  %v445_v54 = vmax.f32 %v1778_v44, 0.0 }
  0x2b   : > { %529 = vmatpush1.msra.mxu1 %v456_v10  ;;  %314 = vmatpush1.msra.mxu0 %v241_v11  ;;  %v1776_v52 = vld [vmem:[%s2427_s25 + $0x1b8] sm:$0xff]  ;;  %v174_v53 = vld [vmem:[%s2427_s25 + $0x8] sm:$0xff]  ;;  %v230_v55 = vmax.f32 %v176_v45, 0.0  ;;  %v1775_v56 = vld [vmem:[%s2427_s25 + $0x1b0] sm:$0xff]  ;;  %v444_v58 = vmax.f32 %v1777_v48, 0.0  ;;  %v229_v59 = vmax.f32 %v175_v49, 0.0 }
  0x2c   : > { %530 = vmatprep.subr.mxu1 %v455_v14  ;;  %315 = vmatprep.subr.mxu0 %v240_v15  ;;  %v173_v57 = vld [vmem:[%s2427_s25] sm:$0xff]  ;;  %v1828_v60 = vld [vmem:[%s2427_s25 + $0x358] sm:$0xff]  ;;  %v226_v61 = vld [vmem:[%s2427_s25 + $0x1a8] sm:$0xff]  ;;  %v443_v62 = vmax.f32 %v1776_v52, 0.0  ;;  %v228_v63 = vmax.f32 %v174_v53, 0.0  ;;  %v442_v2 = vmax.f32 %v1775_v56, 0.0 }
  0x2d   : > { %531 = vmatpush1.msra.mxu1 %v454_v18  ;;  %316 = vmatpush1.msra.mxu0 %v239_v19  ;;  %v1827_v0 = vld [vmem:[%s2427_s25 + $0x350] sm:$0xff]  ;;  %v225_v1 = vld [vmem:[%s2427_s25 + $0x1a0] sm:$0xff]  ;;  %v227_v3 = vmax.f32 %v173_v57, 0.0  ;;  %v1826_v4 = vld [vmem:[%s2427_s25 + $0x348] sm:$0xff]  ;;  %v495_v6 = vmax.f32 %v1828_v60, 0.0  ;;  %v280_v7 = vmax.f32 %v226_v61, 0.0 }
  0x2e   : > { %532 = vmatprep.subr.mxu1 %v453_v22  ;;  %317 = vmatprep.subr.mxu0 %v238_v23  ;;  %v224_v5 = vld [vmem:[%s2427_s25 + $0x198] sm:$0xff]  ;;  %v1825_v8 = vld [vmem:[%s2427_s25 + $0x340] sm:$0xff]  ;;  %v223_v9 = vld [vmem:[%s2427_s25 + $0x190] sm:$0xff]  ;;  %v494_v10 = vmax.f32 %v1827_v0, 0.0  ;;  %v279_v11 = vmax.f32 %v225_v1, 0.0  ;;  %v493_v14 = vmax.f32 %v1826_v4, 0.0 }
  0x2f   : > { %533 = vmatpush1.msra.mxu1 %v452_v26  ;;  %318 = vmatpush1.msra.mxu0 %v237_v27  ;;  %v1824_v12 = vld [vmem:[%s2427_s25 + $0x338] sm:$0xff]  ;;  %v222_v13 = vld [vmem:[%s2427_s25 + $0x188] sm:$0xff]  ;;  %v278_v15 = vmax.f32 %v224_v5, 0.0  ;;  %v1823_v16 = vld [vmem:[%s2427_s25 + $0x330] sm:$0xff]  ;;  %v492_v18 = vmax.f32 %v1825_v8, 0.0  ;;  %v277_v19 = vmax.f32 %v223_v9, 0.0 }
  0x30   : > { %534 = vmatprep.subr.mxu1 %v451_v30  ;;  %319 = vmatprep.subr.mxu0 %v236_v31  ;;  %v221_v17 = vld [vmem:[%s2427_s25 + $0x180] sm:$0xff]  ;;  %v1822_v20 = vld [vmem:[%s2427_s25 + $0x328] sm:$0xff]  ;;  %v220_v21 = vld [vmem:[%s2427_s25 + $0x178] sm:$0xff]  ;;  %v491_v22 = vmax.f32 %v1824_v12, 0.0  ;;  %v276_v23 = vmax.f32 %v222_v13, 0.0  ;;  %v490_v26 = vmax.f32 %v1823_v16, 0.0 }
  0x31   : > { %535 = vmatpush1.msra.mxu1 %v450_v34  ;;  %320 = vmatpush1.msra.mxu0 %v235_v35  ;;  %v1821_v24 = vld [vmem:[%s2427_s25 + $0x320] sm:$0xff]  ;;  %v219_v25 = vld [vmem:[%s2427_s25 + $0x170] sm:$0xff]  ;;  %v275_v27 = vmax.f32 %v221_v17, 0.0  ;;  %v1820_v28 = vld [vmem:[%s2427_s25 + $0x318] sm:$0xff]  ;;  %v489_v30 = vmax.f32 %v1822_v20, 0.0  ;;  %v274_v31 = vmax.f32 %v220_v21, 0.0 }
  0x32   : > { %536 = vmatprep.subr.mxu1 %v449_v38  ;;  %321 = vmatprep.subr.mxu0 %v234_v39  ;;  %v218_v29 = vld [vmem:[%s2427_s25 + $0x168] sm:$0xff]  ;;  %v1819_v32 = vld [vmem:[%s2427_s25 + $0x310] sm:$0xff]  ;;  %v217_v33 = vld [vmem:[%s2427_s25 + $0x160] sm:$0xff]  ;;  %v488_v34 = vmax.f32 %v1821_v24, 0.0  ;;  %v273_v35 = vmax.f32 %v219_v25, 0.0  ;;  %v487_v38 = vmax.f32 %v1820_v28, 0.0 }
  0x33   : > { %537 = vmatpush1.msra.mxu1 %v448_v42  ;;  %322 = vmatpush1.msra.mxu0 %v233_v43  ;;  %v1818_v36 = vld [vmem:[%s2427_s25 + $0x308] sm:$0xff]  ;;  %v216_v37 = vld [vmem:[%s2427_s25 + $0x158] sm:$0xff]  ;;  %v272_v39 = vmax.f32 %v218_v29, 0.0  ;;  %v1817_v40 = vld [vmem:[%s2427_s25 + $0x300] sm:$0xff]  ;;  %v486_v42 = vmax.f32 %v1819_v32, 0.0  ;;  %v271_v43 = vmax.f32 %v217_v33, 0.0 }
  0x34   : > { %538 = vmatprep.subr.mxu1 %v447_v46  ;;  %323 = vmatprep.subr.mxu0 %v232_v47  ;;  %v215_v41 = vld [vmem:[%s2427_s25 + $0x150] sm:$0xff]  ;;  %v1816_v44 = vld [vmem:[%s2427_s25 + $0x2f8] sm:$0xff]  ;;  %v214_v45 = vld [vmem:[%s2427_s25 + $0x148] sm:$0xff]  ;;  %v485_v46 = vmax.f32 %v1818_v36, 0.0  ;;  %v270_v47 = vmax.f32 %v216_v37, 0.0 }
  0x35   : > { %539 = vmatpush1.msra.mxu1 %v446_v50  ;;  %324 = vmatpush1.msra.mxu0 %v231_v51  ;;  %v1815_v48 = vld [vmem:[%s2427_s25 + $0x2f0] sm:$0xff]  ;;  %v213_v49 = vld [vmem:[%s2427_s25 + $0x140] sm:$0xff]  ;;  %v484_v50 = vmax.f32 %v1817_v40, 0.0  ;;  %v269_v51 = vmax.f32 %v215_v41, 0.0  ;;  %v1814_v52 = vld [vmem:[%s2427_s25 + $0x2e8] sm:$0xff] }
  0x36   : > { %540 = vmatprep.subr.mxu1 %v445_v54  ;;  %325 = vmatprep.subr.mxu0 %v230_v55  ;;  %v212_v53 = vld [vmem:[%s2427_s25 + $0x138] sm:$0xff]  ;;  %v483_v54 = vmax.f32 %v1816_v44, 0.0  ;;  %v268_v55 = vmax.f32 %v214_v45, 0.0  ;;  %v1813_v56 = vld [vmem:[%s2427_s25 + $0x2e0] sm:$0xff]  ;;  %v211_v57 = vld [vmem:[%s2427_s25 + $0x130] sm:$0xff] }
  0x37   : > { %541 = vmatpush1.msra.mxu1 %v444_v58  ;;  %326 = vmatpush1.msra.mxu0 %v229_v59  ;;  %v482_v58 = vmax.f32 %v1815_v48, 0.0  ;;  %v267_v59 = vmax.f32 %v213_v49, 0.0  ;;  %v1812_v60 = vld [vmem:[%s2427_s25 + $0x2d8] sm:$0xff]  ;;  %v210_v61 = vld [vmem:[%s2427_s25 + $0x128] sm:$0xff]  ;;  %v1811_v0 = vld [vmem:[%s2427_s25 + $0x2d0] sm:$0xff] }
  0x38   : > { %542 = vmatprep.subr.mxu1 %v443_v62  ;;  %327 = vmatprep.subr.mxu0 %v228_v63  ;;  %v481_v62 = vmax.f32 %v1814_v52, 0.0  ;;  %v266_v63 = vmax.f32 %v212_v53, 0.0  ;;  %v209_v1 = vld [vmem:[%s2427_s25 + $0x120] sm:$0xff]  ;;  %v1810_v4 = vld [vmem:[%s2427_s25 + $0x2c8] sm:$0xff]  ;;  %v208_v5 = vld [vmem:[%s2427_s25 + $0x118] sm:$0xff] }
  0x39   : > { %543 = vmatpush1.msra.mxu1 %v442_v2  ;;  %328 = vmatpush1.msra.mxu0 %v227_v3  ;;  %v480_v2 = vmax.f32 %v1813_v56, 0.0  ;;  %v265_v3 = vmax.f32 %v211_v57, 0.0  ;;  %v1809_v8 = vld [vmem:[%s2427_s25 + $0x2c0] sm:$0xff]  ;;  %v207_v9 = vld [vmem:[%s2427_s25 + $0x110] sm:$0xff]  ;;  %v1808_v12 = vld [vmem:[%s2427_s25 + $0x2b8] sm:$0xff]  ;;  %v477_v13 = vmax.f32 %v1810_v4, 0.0 }
  0x3a   : > { %554 = vmatprep.subr.mxu1 %v495_v6  ;;  %339 = vmatprep.subr.mxu0 %v280_v7  ;;  %v479_v6 = vmax.f32 %v1812_v60, 0.0  ;;  %v264_v7 = vmax.f32 %v210_v61, 0.0  ;;  %v206_v16 = vld [vmem:[%s2427_s25 + $0x108] sm:$0xff]  ;;  %v476_v17 = vmax.f32 %v1809_v8, 0.0  ;;  %v475_v20 = vmax.f32 %v1808_v12, 0.0  ;;  %v205_v21 = vld [vmem:[%s2427_s25 + $0x100] sm:$0xff] }
  0x3b   : > { %555 = vmatpush2.msra.mxu1 %v494_v10  ;;  %340 = vmatpush2.msra.mxu0 %v279_v11  ;;  %v478_v10 = vmax.f32 %v1811_v0, 0.0  ;;  %v263_v11 = vmax.f32 %v209_v1, 0.0  ;;  %v1830_v24 = vld [vmem:[%s2539_s29 + $0x38] sm:$0xff]  ;;  %v260_v25 = vmax.f32 %v206_v16, 0.0  ;;  %v1829_v29 = vld [vmem:[%s2539_s29 + $0x30] sm:$0xff]  ;;  %v1940_v36 = vld [vmem:[%s2427_s25 + $0x5e8] sm:$0xff] }
  0x3c   : > { %556 = vmatprep.subr.mxu1 %v493_v14  ;;  %341 = vmatprep.subr.mxu0 %v278_v15  ;;  %v262_v14 = vmax.f32 %v208_v5, 0.0  ;;  %v1807_v15 = vld [vmem:[%s2427_s25 + $0x2b0] sm:$0xff]  ;;  %v1942_v28 = vld [vmem:[%s2427_s25 + $0x5f8] sm:$0xff]  ;;  %v282_v37 = vld [vmem:[%s2539_s29 + $0x8] sm:$0xff] }
  0x3d   : > { %557 = vmatpush2.msra.mxu1 %v492_v18  ;;  %342 = vmatpush2.msra.mxu0 %v277_v19  ;;  %v261_v18 = vmax.f32 %v207_v9, 0.0  ;;  %v1944_v19 = vld [vmem:[%s2427_s25 + $0x608] sm:$0xff]  ;;  %v1874_v32 = vld [vmem:[%s2427_s25 + $0x450] sm:$0xff]  ;;  %v1939_v40 = vld [vmem:[%s2427_s25 + $0x5e0] sm:$0xff] }
  0x3e   : > { %558 = vmatprep.subr.mxu1 %v491_v22  ;;  %343 = vmatprep.subr.mxu0 %v276_v23  ;;  %v1943_v22 = vld [vmem:[%s2427_s25 + $0x600] sm:$0xff]  ;;  %v474_v23 = vmax.f32 %v1807_v15, 0.0  ;;  %v1941_v33 = vld [vmem:[%s2427_s25 + $0x5f0] sm:$0xff]  ;;  %v1871_v44 = vld [vmem:[%s2427_s25 + $0x438] sm:$0xff] }
  0x3f   : > { %559 = vmatpush2.msra.mxu1 %v490_v26  ;;  %344 = vmatpush2.msra.mxu0 %v275_v27  ;;  %v1875_v26 = vld [vmem:[%s2427_s25 + $0x458] sm:$0xff]  ;;  %v903_v27 = vmax.f32 %v1944_v19, 0.0  ;;  %v281_v41 = vld [vmem:[%s2539_s29] sm:$0xff]  ;;  %v1870_v48 = vld [vmem:[%s2427_s25 + $0x430] sm:$0xff] }
  0x40   : > { %560 = vmatprep.subr.mxu1 %v489_v30  ;;  %345 = vmatprep.subr.mxu0 %v274_v31  ;;  %v259_v30 = vmax.f32 %v205_v21, 0.0  ;;  %v902_v31 = vmax.f32 %v1943_v22, 0.0  ;;  %v1938_v45 = vld [vmem:[%s2427_s25 + $0x5d8] sm:$0xff]  ;;  %v1937_v49 = vld [vmem:[%s2427_s25 + $0x5d0] sm:$0xff]  ;;  %v1869_v52 = vld [vmem:[%s2427_s25 + $0x428] sm:$0xff] }
  0x41   : > { %561 = vmatpush2.msra.mxu1 %v488_v34  ;;  %346 = vmatpush2.msra.mxu0 %v273_v35  ;;  %v688_v34 = vmax.f32 %v1875_v26, 0.0  ;;  %v1873_v35 = vld [vmem:[%s2427_s25 + $0x448] sm:$0xff]  ;;  %v1868_v56 = vld [vmem:[%s2427_s25 + $0x420] sm:$0xff]  ;;  %v1867_v60 = vld [vmem:[%s2427_s25 + $0x418] sm:$0xff] }
  0x42   : > { %562 = vmatprep.subr.mxu1 %v487_v38  ;;  %347 = vmatprep.subr.mxu0 %v272_v39  ;;  %v901_v38 = vmax.f32 %v1942_v28, 0.0  ;;  %v1872_v39 = vld [vmem:[%s2427_s25 + $0x440] sm:$0xff]  ;;  %v1936_v53 = vld [vmem:[%s2427_s25 + $0x5c8] sm:$0xff]  ;;  %v1934_v61 = vld [vmem:[%s2427_s25 + $0x5b8] sm:$0xff] }
  0x43   : > { %563 = vmatpush2.msra.mxu1 %v486_v42  ;;  %348 = vmatpush2.msra.mxu0 %v271_v43  ;;  %v687_v42 = vmax.f32 %v1874_v32, 0.0  ;;  %v900_v43 = vmax.f32 %v1941_v33, 0.0  ;;  %v1935_v57 = vld [vmem:[%s2427_s25 + $0x5c0] sm:$0xff]  ;;  %v1866_v0 = vld [vmem:[%s2427_s25 + $0x410] sm:$0xff]  ;;  %v1865_v4 = vld [vmem:[%s2427_s25 + $0x408] sm:$0xff] }
  0x44   : > { %564 = vmatprep.subr.mxu1 %v485_v46  ;;  %349 = vmatprep.subr.mxu0 %v270_v47  ;;  %v686_v46 = vmax.f32 %v1873_v35, 0.0  ;;  %v899_v47 = vmax.f32 %v1940_v36, 0.0  ;;  %v1933_v1 = vld [vmem:[%s2427_s25 + $0x5b0] sm:$0xff]  ;;  %v1932_v5 = vld [vmem:[%s2427_s25 + $0x5a8] sm:$0xff]  ;;  %v1864_v8 = vld [vmem:[%s2427_s25 + $0x400] sm:$0xff] }
  0x45   : > { %565 = vmatpush2.msra.mxu1 %v484_v50  ;;  %350 = vmatpush2.msra.mxu0 %v269_v51  ;;  %v685_v50 = vmax.f32 %v1872_v39, 0.0  ;;  %v898_v51 = vmax.f32 %v1939_v40, 0.0  ;;  %v1931_v9 = vld [vmem:[%s2427_s25 + $0x5a0] sm:$0xff]  ;;  %v1863_v12 = vld [vmem:[%s2427_s25 + $0x3f8] sm:$0xff]  ;;  %v891_v15 = vmax.f32 %v1932_v5, 0.0  ;;  %v1862_v16 = vld [vmem:[%s2427_s25 + $0x3f0] sm:$0xff] }
  0x46   : > { %566 = vmatprep.subr.mxu1 %v483_v54  ;;  %351 = vmatprep.subr.mxu0 %v268_v55  ;;  %v684_v54 = vmax.f32 %v1871_v44, 0.0  ;;  %v897_v55 = vmax.f32 %v1938_v45, 0.0  ;;  %v890_v19 = vmax.f32 %v1931_v9, 0.0  ;;  %v1928_v21 = vld [vmem:[%s2427_s25 + $0x588] sm:$0xff]  ;;  %v676_v22 = vmax.f32 %v1863_v12, 0.0  ;;  %v1859_v28 = vld [vmem:[%s2427_s25 + $0x3d8] sm:$0xff] }
  0x47   : > { %567 = vmatpush2.msra.mxu1 %v482_v58  ;;  %352 = vmatpush2.msra.mxu0 %v267_v59  ;;  %v683_v58 = vmax.f32 %v1870_v48, 0.0  ;;  %v896_v59 = vmax.f32 %v1937_v49, 0.0  ;;  %v675_v26 = vmax.f32 %v1862_v16, 0.0  ;;  %v1858_v32 = vld [vmem:[%s2427_s25 + $0x3d0] sm:$0xff]  ;;  %v1857_v36 = vld [vmem:[%s2427_s25 + $0x3c8] sm:$0xff]  ;;  %v1856_v40 = vld [vmem:[%s2427_s25 + $0x3c0] sm:$0xff] }
  0x48   : > { %568 = vmatprep.subr.mxu1 %v481_v62  ;;  %353 = vmatprep.subr.mxu0 %v266_v63  ;;  %v682_v62 = vmax.f32 %v1869_v52, 0.0  ;;  %v895_v63 = vmax.f32 %v1936_v53, 0.0  ;;  %v1925_v33 = vld [vmem:[%s2427_s25 + $0x570] sm:$0xff]  ;;  %v1855_v44 = vld [vmem:[%s2427_s25 + $0x3b8] sm:$0xff]  ;;  %v1853_v52 = vld [vmem:[%s2427_s25 + $0x3a8] sm:$0xff] }
  0x49   : > { %569 = vmatpush2.msra.mxu1 %v480_v2  ;;  %354 = vmatpush2.msra.mxu0 %v265_v3  ;;  %v681_v2 = vmax.f32 %v1868_v56, 0.0  ;;  %v894_v3 = vmax.f32 %v1935_v57, 0.0  ;;  %v1922_v45 = vld [vmem:[%s2427_s25 + $0x558] sm:$0xff]  ;;  %v1854_v48 = vld [vmem:[%s2427_s25 + $0x3b0] sm:$0xff]  ;;  %v1920_v53 = vld [vmem:[%s2427_s25 + $0x548] sm:$0xff] }
  0x4a   : > { %570 = vmatprep.subr.mxu1 %v479_v6  ;;  %355 = vmatprep.subr.mxu0 %v264_v7  ;;  %v680_v6 = vmax.f32 %v1867_v60, 0.0  ;;  %v893_v7 = vmax.f32 %v1934_v61, 0.0  ;;  %v1921_v49 = vld [vmem:[%s2427_s25 + $0x550] sm:$0xff]  ;;  %v1852_v56 = vld [vmem:[%s2427_s25 + $0x3a0] sm:$0xff]  ;;  %v1851_v60 = vld [vmem:[%s2427_s25 + $0x398] sm:$0xff] }
  0x4b   : > { %571 = vmatpush2.msra.mxu1 %v478_v10  ;;  %356 = vmatpush2.msra.mxu0 %v263_v11  ;;  %v679_v10 = vmax.f32 %v1866_v0, 0.0  ;;  %v892_v11 = vmax.f32 %v1933_v1, 0.0  ;;  %v1919_v57 = vld [vmem:[%s2427_s25 + $0x540] sm:$0xff]  ;;  %v1918_v61 = vld [vmem:[%s2427_s25 + $0x538] sm:$0xff]  ;;  %v1850_v0 = vld [vmem:[%s2427_s25 + $0x390] sm:$0xff] }
  0x4c   : > { %572 = vmatprep.subr.mxu1 %v477_v13  ;;  %357 = vmatprep.subr.mxu0 %v262_v14  ;;  %v1930_v13 = vld [vmem:[%s2427_s25 + $0x598] sm:$0xff]  ;;  %v678_v14 = vmax.f32 %v1865_v4, 0.0  ;;  %v1917_v1 = vld [vmem:[%s2427_s25 + $0x530] sm:$0xff]  ;;  %v1849_v4 = vld [vmem:[%s2427_s25 + $0x388] sm:$0xff] }
  0x4d   : > { %573 = vmatpush2.msra.mxu1 %v476_v17  ;;  %358 = vmatpush2.msra.mxu0 %v261_v18  ;;  %v1929_v17 = vld [vmem:[%s2427_s25 + $0x590] sm:$0xff]  ;;  %v677_v18 = vmax.f32 %v1864_v8, 0.0  ;;  %v1916_v5 = vld [vmem:[%s2427_s25 + $0x528] sm:$0xff]  ;;  %v1848_v8 = vld [vmem:[%s2427_s25 + $0x380] sm:$0xff] }
  0x4e   : > { %574 = vmatprep.subr.mxu1 %v475_v20  ;;  %1835 = vmatprep.mubr.msk.f32.mxu1 %vm287_vm0, %v1830_v24  ;;  %v1861_v20 = vld [vmem:[%s2427_s25 + $0x3e8] sm:$0xff]  ;;  %v1860_v24 = vld [vmem:[%s2427_s25 + $0x3e0] sm:$0xff]  ;;  %v1847_v12 = vld [vmem:[%s2427_s25 + $0x378] sm:$0xff] }
  0x4f   : > { %575 = vmatpush2.msra.mxu1 %v474_v23  ;;  %359 = vmatprep.subr.mxu0 %v260_v25  ;;  %v889_v23 = vmax.f32 %v1930_v13, 0.0  ;;  %v1927_v25 = vld [vmem:[%s2427_s25 + $0x580] sm:$0xff]  ;;  %v1914_v13 = vld [vmem:[%s2427_s25 + $0x518] sm:$0xff]  ;;  %v1846_v16 = vld [vmem:[%s2427_s25 + $0x370] sm:$0xff] }
  0x50   : > { %577 = vmatmul.mubr.f32.vlgmr.msra.gmra.mxu1 %v1829_v29  ;;  %942 = vmatprep.subr.mxu1 %v903_v27  ;;  %v888_v27 = vmax.f32 %v1929_v17, 0.0  ;;  %v1926_v29 = vld [vmem:[%s2427_s25 + $0x578] sm:$0xff]  ;;  %v886_v35 = vmax.f32 %v1927_v25, 0.0  ;;  %v1915_v9 = vld [vmem:[%s2427_s25 + $0x520] sm:$0xff]  ;;  %v1913_v17 = vld [vmem:[%s2427_s25 + $0x510] sm:$0xff] }
  0x51   : > { %360 = vmatpush2.msra.mxu0 %v259_v30  ;;  %943 = vmatpush1.msra.mxu1 %v902_v31  ;;  %v674_v30 = vmax.f32 %v1861_v20, 0.0  ;;  %v887_v31 = vmax.f32 %v1928_v21, 0.0  ;;  %v885_v39 = vmax.f32 %v1926_v29, 0.0  ;;  %v1845_v20 = vld [vmem:[%s2427_s25 + $0x368] sm:$0xff]  ;;  %v1966_v21 = vld [vmem:[%s2427_s25 + $0x6b8] sm:$0xff]  ;;  %v1965_v25 = vld [vmem:[%s2427_s25 + $0x6b0] sm:$0xff] }
  0x52   : > { %1772 = vmatprep.mubr.msk.f32.mxu0 %vm287_vm0, %v282_v37  ;;  %727 = vmatprep.subr.mxu0 %v688_v34  ;;  %v673_v34 = vmax.f32 %v1860_v24, 0.0  ;;  %v1924_v37 = vld [vmem:[%s2427_s25 + $0x568] sm:$0xff]  ;;  %v1844_v24 = vld [vmem:[%s2427_s25 + $0x360] sm:$0xff] }
  0x53   : > { %944 = vmatprep.subr.mxu1 %v901_v38  ;;  %362 = vmatmul.mubr.f32.vlgmr.msra.gmra.mxu0 %v281_v41  ;;  %v672_v38 = vmax.f32 %v1859_v28, 0.0  ;;  %v1923_v41 = vld [vmem:[%s2427_s25 + $0x560] sm:$0xff]  ;;  %v1897_v28 = vld [vmem:[%s2427_s25 + $0x508] sm:$0xff] }
  0x54   : > { %728 = vmatpush1.msra.mxu0 %v687_v42  ;;  %945 = vmatpush1.msra.mxu1 %v900_v43  ;;  %v671_v42 = vmax.f32 %v1858_v32, 0.0  ;;  %v884_v43 = vmax.f32 %v1925_v33, 0.0  ;;  %v1964_v29 = vld [vmem:[%s2427_s25 + $0x6a8] sm:$0xff]  ;;  %v1896_v32 = vld [vmem:[%s2427_s25 + $0x500] sm:$0xff] }
  0x55   : > { %729 = vmatprep.subr.mxu0 %v686_v46  ;;  %946 = vmatprep.subr.mxu1 %v899_v47  ;;  %v670_v46 = vmax.f32 %v1857_v36, 0.0  ;;  %v883_v47 = vmax.f32 %v1924_v37, 0.0  ;;  %v1963_v33 = vld [vmem:[%s2427_s25 + $0x6a0] sm:$0xff]  ;;  %v1895_v36 = vld [vmem:[%s2427_s25 + $0x4f8] sm:$0xff] }
  0x56   : > { %730 = vmatpush1.msra.mxu0 %v685_v50  ;;  %947 = vmatpush1.msra.mxu1 %v898_v51  ;;  %v669_v50 = vmax.f32 %v1856_v40, 0.0  ;;  %v882_v51 = vmax.f32 %v1923_v41, 0.0  ;;  %v1962_v37 = vld [vmem:[%s2427_s25 + $0x698] sm:$0xff]  ;;  %v1894_v40 = vld [vmem:[%s2427_s25 + $0x4f0] sm:$0xff] }
  0x57   : > { %731 = vmatprep.subr.mxu0 %v684_v54  ;;  %948 = vmatprep.subr.mxu1 %v897_v55  ;;  %v668_v54 = vmax.f32 %v1855_v44, 0.0  ;;  %v881_v55 = vmax.f32 %v1922_v45, 0.0  ;;  %v1961_v41 = vld [vmem:[%s2427_s25 + $0x690] sm:$0xff]  ;;  %v1893_v44 = vld [vmem:[%s2427_s25 + $0x4e8] sm:$0xff] }
  0x58   : > { %732 = vmatpush1.msra.mxu0 %v683_v58  ;;  %949 = vmatpush1.msra.mxu1 %v896_v59  ;;  %v667_v58 = vmax.f32 %v1854_v48, 0.0  ;;  %v880_v59 = vmax.f32 %v1921_v49, 0.0  ;;  %v1960_v45 = vld [vmem:[%s2427_s25 + $0x688] sm:$0xff]  ;;  %v1892_v48 = vld [vmem:[%s2427_s25 + $0x4e0] sm:$0xff] }
  0x59   : > { %733 = vmatprep.subr.mxu0 %v682_v62  ;;  %950 = vmatprep.subr.mxu1 %v895_v63  ;;  %v666_v62 = vmax.f32 %v1853_v52, 0.0  ;;  %v879_v63 = vmax.f32 %v1920_v53, 0.0  ;;  %v1959_v49 = vld [vmem:[%s2427_s25 + $0x680] sm:$0xff]  ;;  %v1891_v52 = vld [vmem:[%s2427_s25 + $0x4d8] sm:$0xff] }
  0x5a   : > { %734 = vmatpush1.msra.mxu0 %v681_v2  ;;  %951 = vmatpush1.msra.mxu1 %v894_v3  ;;  %v665_v2 = vmax.f32 %v1852_v56, 0.0  ;;  %v878_v3 = vmax.f32 %v1919_v57, 0.0  ;;  %v1958_v53 = vld [vmem:[%s2427_s25 + $0x678] sm:$0xff]  ;;  %v1890_v56 = vld [vmem:[%s2427_s25 + $0x4d0] sm:$0xff] }
  0x5b   : > { %735 = vmatprep.subr.mxu0 %v680_v6  ;;  %952 = vmatprep.subr.mxu1 %v893_v7  ;;  %v664_v6 = vmax.f32 %v1851_v60, 0.0  ;;  %v877_v7 = vmax.f32 %v1918_v61, 0.0  ;;  %v1957_v57 = vld [vmem:[%s2427_s25 + $0x670] sm:$0xff]  ;;  %v1889_v60 = vld [vmem:[%s2427_s25 + $0x4c8] sm:$0xff] }
  0x5c   : > { %736 = vmatpush1.msra.mxu0 %v679_v10  ;;  %953 = vmatpush1.msra.mxu1 %v892_v11  ;;  %v663_v10 = vmax.f32 %v1850_v0, 0.0  ;;  %v876_v11 = vmax.f32 %v1917_v1, 0.0  ;;  %v1956_v61 = vld [vmem:[%s2427_s25 + $0x668] sm:$0xff]  ;;  %v1888_v0 = vld [vmem:[%s2427_s25 + $0x4c0] sm:$0xff] }
  0x5d   : > { %737 = vmatprep.subr.mxu0 %v678_v14  ;;  %954 = vmatprep.subr.mxu1 %v891_v15  ;;  %v662_v14 = vmax.f32 %v1849_v4, 0.0  ;;  %v875_v15 = vmax.f32 %v1916_v5, 0.0  ;;  %v1955_v1 = vld [vmem:[%s2427_s25 + $0x660] sm:$0xff]  ;;  %v1887_v4 = vld [vmem:[%s2427_s25 + $0x4b8] sm:$0xff]  ;;  %v702_v5 = vmax.f32 %v1889_v60, 0.0 }
  0x5e   : > { %738 = vmatpush1.msra.mxu0 %v677_v18  ;;  %955 = vmatpush1.msra.mxu1 %v890_v19  ;;  %v661_v18 = vmax.f32 %v1848_v8, 0.0  ;;  %v874_v19 = vmax.f32 %v1915_v9, 0.0  ;;  %v701_v8 = vmax.f32 %v1888_v0, 0.0  ;;  %v914_v9 = vmax.f32 %v1955_v1, 0.0  ;;  %v2080_v0 = vld [vmem:[%s2427_s25 + $0x958] sm:$0xff]  ;;  %v1967_v1 = vld [vmem:[%s2539_s29 + $0x90] sm:$0xff] }
  0x5f   : > { %739 = vmatprep.subr.mxu0 %v676_v22  ;;  %956 = vmatprep.subr.mxu1 %v889_v23  ;;  %v660_v22 = vmax.f32 %v1847_v12, 0.0  ;;  %v873_v23 = vmax.f32 %v1914_v13, 0.0  ;;  %v700_v12 = vmax.f32 %v1887_v4, 0.0  ;;  %v1885_v13 = vld [vmem:[%s2427_s25 + $0x4a8] sm:$0xff]  ;;  %v2012_v4 = vld [vmem:[%s2427_s25 + $0x7b0] sm:$0xff] }
  0x60   : > { %740 = vmatpush1.msra.mxu0 %v675_v26  ;;  %957 = vmatpush1.msra.mxu1 %v888_v27  ;;  %v659_v26 = vmax.f32 %v1846_v16, 0.0  ;;  %v872_v27 = vmax.f32 %v1913_v17, 0.0  ;;  %v1884_v17 = vld [vmem:[%s2427_s25 + $0x4a0] sm:$0xff] }
  0x61   : > { %741 = vmatprep.subr.mxu0 %v674_v30  ;;  %958 = vmatprep.subr.mxu1 %v887_v31  ;;  %v658_v30 = vmax.f32 %v1845_v20, 0.0  ;;  %v925_v31 = vmax.f32 %v1966_v21, 0.0 }
  0x62   : > { %742 = vmatpush1.msra.mxu0 %v673_v34  ;;  %959 = vmatpush1.msra.mxu1 %v886_v35  ;;  %v657_v34 = vmax.f32 %v1844_v24, 0.0  ;;  %v924_v35 = vmax.f32 %v1965_v25, 0.0  ;;  %v1883_v24 = vld [vmem:[%s2427_s25 + $0x498] sm:$0xff] }
  0x63   : > { %743 = vmatprep.subr.mxu0 %v672_v38  ;;  %960 = vmatprep.subr.mxu1 %v885_v39  ;;  %v710_v38 = vmax.f32 %v1897_v28, 0.0  ;;  %v923_v39 = vmax.f32 %v1964_v29, 0.0  ;;  %v1950_v25 = vld [vmem:[%s2427_s25 + $0x638] sm:$0xff]  ;;  %v1882_v29 = vld [vmem:[%s2427_s25 + $0x490] sm:$0xff] }
  0x64   : > { %744 = vmatpush1.msra.mxu0 %v671_v42  ;;  %961 = vmatpush1.msra.mxu1 %v884_v43  ;;  %v709_v42 = vmax.f32 %v1896_v32, 0.0  ;;  %v922_v43 = vmax.f32 %v1963_v33, 0.0  ;;  %v284_v28 = vld [vmem:[%s2539_s29 + $0x18] sm:$0xff]  ;;  %v696_v32 = vmax.f32 %v1883_v24, 0.0  ;;  %v909_v33 = vmax.f32 %v1950_v25, 0.0  ;;  %v2007_v24 = vld [vmem:[%s2427_s25 + $0x788] sm:$0xff] }
  0x65   : > { %745 = vmatprep.subr.mxu0 %v670_v46  ;;  %962 = vmatprep.subr.mxu1 %v883_v47  ;;  %v708_v46 = vmax.f32 %v1895_v36, 0.0  ;;  %v921_v47 = vmax.f32 %v1962_v37, 0.0  ;;  %v1880_v36 = vld [vmem:[%s2427_s25 + $0x480] sm:$0xff]  ;;  %v2074_v25 = vld [vmem:[%s2427_s25 + $0x928] sm:$0xff] }
  0x66   : > { %746 = vmatpush1.msra.mxu0 %v669_v50  ;;  %963 = vmatpush1.msra.mxu1 %v882_v51  ;;  %v707_v50 = vmax.f32 %v1894_v40, 0.0  ;;  %v920_v51 = vmax.f32 %v1961_v41, 0.0  ;;  %v1947_v37 = vld [vmem:[%s2427_s25 + $0x620] sm:$0xff]  ;;  %v695_v40 = vmax.f32 %v1882_v29, 0.0 }
  0x67   : > { %747 = vmatprep.subr.mxu0 %v668_v54  ;;  %964 = vmatprep.subr.mxu1 %v881_v55  ;;  %v706_v54 = vmax.f32 %v1893_v44, 0.0  ;;  %v919_v55 = vmax.f32 %v1960_v45, 0.0  ;;  %v1946_v45 = vld [vmem:[%s2427_s25 + $0x618] sm:$0xff]  ;;  %v2073_v29 = vld [vmem:[%s2427_s25 + $0x920] sm:$0xff] }
  0x68   : > { %748 = vmatpush1.msra.mxu0 %v667_v58  ;;  %965 = vmatpush1.msra.mxu1 %v880_v59  ;;  %v705_v58 = vmax.f32 %v1892_v48, 0.0  ;;  %v918_v59 = vmax.f32 %v1959_v49, 0.0  ;;  %v1878_v48 = vld [vmem:[%s2427_s25 + $0x470] sm:$0xff] }
  0x69   : > { %749 = vmatprep.subr.mxu0 %v666_v62  ;;  %966 = vmatprep.subr.mxu1 %v879_v63  ;;  %v704_v62 = vmax.f32 %v1891_v52, 0.0  ;;  %v917_v63 = vmax.f32 %v1958_v53, 0.0  ;;  %v1945_v49 = vld [vmem:[%s2427_s25 + $0x610] sm:$0xff]  ;;  %v286_v52 = vld [vmem:[%s2539_s29 + $0x28] sm:$0xff]  ;;  %v905_v53 = vmax.f32 %v1946_v45, 0.0  ;;  %v2069_v45 = vld [vmem:[%s2427_s25 + $0x900] sm:$0xff] }
  0x6a   : > { %750 = vmatpush1.msra.mxu0 %v665_v2  ;;  %967 = vmatpush1.msra.mxu1 %v878_v3  ;;  %v703_v2 = vmax.f32 %v1890_v56, 0.0  ;;  %v916_v3 = vmax.f32 %v1957_v57, 0.0  ;;  %v691_v56 = vmax.f32 %v1878_v48, 0.0  ;;  %v904_v57 = vmax.f32 %v1945_v49, 0.0  ;;  %v2001_v48 = vld [vmem:[%s2427_s25 + $0x758] sm:$0xff] }
  0x6b   : > { %751 = vmatprep.subr.mxu0 %v664_v6  ;;  %968 = vmatprep.subr.mxu1 %v877_v7  ;;  %v915_v6 = vmax.f32 %v1956_v61, 0.0  ;;  %v1954_v7 = vld [vmem:[%s2427_s25 + $0x658] sm:$0xff] }
  0x6c   : > { %752 = vmatpush1.msra.mxu0 %v663_v10  ;;  %969 = vmatpush1.msra.mxu1 %v876_v11  ;;  %v1886_v10 = vld [vmem:[%s2427_s25 + $0x4b0] sm:$0xff]  ;;  %v913_v16 = vmax.f32 %v1954_v7, 0.0  ;;  %v2013_v61 = vld [vmem:[%s2427_s25 + $0x7b8] sm:$0xff]  ;;  %v2011_v7 = vld [vmem:[%s2427_s25 + $0x7a8] sm:$0xff] }
  0x6d   : > { %753 = vmatprep.subr.mxu0 %v662_v14  ;;  %970 = vmatprep.subr.mxu1 %v875_v15  ;;  %v1953_v11 = vld [vmem:[%s2427_s25 + $0x650] sm:$0xff]  ;;  %v1952_v14 = vld [vmem:[%s2427_s25 + $0x648] sm:$0xff]  ;;  %v699_v20 = vmax.f32 %v1886_v10, 0.0  ;;  %v1331_v10 = vmax.f32 %v2080_v0, 0.0  ;;  %v2068_v49 = vld [vmem:[%s2427_s25 + $0x8f8] sm:$0xff] }
  0x6e   : > { %754 = vmatpush1.msra.mxu0 %v661_v18  ;;  %971 = vmatpush1.msra.mxu1 %v874_v19  ;;  %v1832_v15 = vld [vmem:[%s2539_s29 + $0x48] sm:$0xff]  ;;  %v1951_v18 = vld [vmem:[%s2427_s25 + $0x640] sm:$0xff]  ;;  %v912_v21 = vmax.f32 %v1953_v11, 0.0  ;;  %v1997_v0 = vld [vmem:[%s2427_s25 + $0x738] sm:$0xff] }
  0x6f   : > { %755 = vmatprep.subr.mxu0 %v660_v22  ;;  %972 = vmatprep.subr.mxu1 %v873_v23  ;;  %v1831_v19 = vld [vmem:[%s2539_s29 + $0x40] sm:$0xff]  ;;  %v698_v22 = vmax.f32 %v1885_v13, 0.0  ;;  %v911_v23 = vmax.f32 %v1952_v14, 0.0  ;;  %v1117_v14 = vmax.f32 %v2012_v4, 0.0  ;;  %v1996_v4 = vld [vmem:[%s2427_s25 + $0x730] sm:$0xff] }
  0x70   : > { %756 = vmatpush1.msra.mxu0 %v659_v26  ;;  %973 = vmatpush1.msra.mxu1 %v872_v27  ;;  %v697_v26 = vmax.f32 %v1884_v17, 0.0  ;;  %v910_v27 = vmax.f32 %v1951_v18, 0.0  ;;  %v2010_v11 = vld [vmem:[%s2427_s25 + $0x7a0] sm:$0xff]  ;;  %v2076_v17 = vld [vmem:[%s2427_s25 + $0x938] sm:$0xff]  ;;  %v1116_v18 = vmax.f32 %v2011_v7, 0.0 }
  0x71   : > { %757 = vmatprep.subr.mxu0 %v658_v30  ;;  %984 = vmatprep.subr.mxu1 %v925_v31  ;;  %v1949_v30 = vld [vmem:[%s2427_s25 + $0x630] sm:$0xff]  ;;  %v1834_v31 = vld [vmem:[%s2539_s29 + $0x58] sm:$0xff]  ;;  %v1898_v13 = vld [vmem:[%s2539_s29 + $0x60] sm:$0xff] }
  0x72   : > { %758 = vmatpush1.msra.mxu0 %v657_v34  ;;  %985 = vmatpush2.msra.mxu1 %v924_v35  ;;  %v1881_v34 = vld [vmem:[%s2427_s25 + $0x488] sm:$0xff]  ;;  %v908_v41 = vmax.f32 %v1949_v30, 0.0 }
  0x73   : > { %769 = vmatprep.subr.mxu0 %v710_v38  ;;  %986 = vmatprep.subr.mxu1 %v923_v39  ;;  %v1948_v35 = vld [vmem:[%s2427_s25 + $0x628] sm:$0xff]  ;;  %v283_v38 = vld [vmem:[%s2539_s29 + $0x10] sm:$0xff] }
  0x74   : > { %770 = vmatpush2.msra.mxu0 %v709_v42  ;;  %987 = vmatpush2.msra.mxu1 %v922_v43  ;;  %v1833_v39 = vld [vmem:[%s2539_s29 + $0x50] sm:$0xff]  ;;  %v1879_v42 = vld [vmem:[%s2427_s25 + $0x478] sm:$0xff]  ;;  %v694_v43 = vmax.f32 %v1881_v34, 0.0  ;;  %v907_v44 = vmax.f32 %v1948_v35, 0.0  ;;  %v1112_v34 = vmax.f32 %v2007_v24, 0.0  ;;  %v1325_v35 = vmax.f32 %v2074_v25, 0.0 }
  0x75   : > { %771 = vmatprep.subr.mxu0 %v708_v46  ;;  %988 = vmatprep.subr.mxu1 %v921_v47  ;;  %v693_v46 = vmax.f32 %v1880_v36, 0.0  ;;  %v906_v47 = vmax.f32 %v1947_v37, 0.0  ;;  %v2004_v36 = vld [vmem:[%s2427_s25 + $0x770] sm:$0xff]  ;;  %v1991_v24 = vld [vmem:[%s2427_s25 + $0x708] sm:$0xff] }
  0x76   : > { %772 = vmatpush2.msra.mxu0 %v707_v50  ;;  %989 = vmatpush2.msra.mxu1 %v920_v51  ;;  %v692_v50 = vmax.f32 %v1879_v42, 0.0  ;;  %v1877_v51 = vld [vmem:[%s2427_s25 + $0x468] sm:$0xff]  ;;  %v2071_v37 = vld [vmem:[%s2427_s25 + $0x910] sm:$0xff] }
  0x77   : > { %773 = vmatprep.subr.mxu0 %v706_v54  ;;  %990 = vmatprep.subr.mxu1 %v919_v55  ;;  %v2082_v54 = vld [vmem:[%s2427_s25 + $0x968] sm:$0xff]  ;;  %v285_v55 = vld [vmem:[%s2539_s29 + $0x20] sm:$0xff]  ;;  %v690_v60 = vmax.f32 %v1877_v51, 0.0 }
  0x78   : > { %774 = vmatpush2.msra.mxu0 %v705_v58  ;;  %991 = vmatpush2.msra.mxu1 %v918_v59  ;;  %v1876_v58 = vld [vmem:[%s2427_s25 + $0x460] sm:$0xff]  ;;  %v2058_v25 = vld [vmem:[%s2427_s25 + $0x8a8] sm:$0xff] }
  0x79   : > { %775 = vmatprep.subr.mxu0 %v704_v62  ;;  %992 = vmatprep.subr.mxu1 %v917_v63  ;;  %v2081_v59 = vld [vmem:[%s2427_s25 + $0x960] sm:$0xff]  ;;  %v1968_v62 = vld [vmem:[%s2539_s29 + $0x98] sm:$0xff]  ;;  %v1333_v63 = vmax.f32 %v2082_v54, 0.0 }
  0x7a   : > { %776 = vmatpush2.msra.mxu0 %v703_v2  ;;  %993 = vmatpush2.msra.mxu1 %v916_v3  ;;  %v689_v2 = vmax.f32 %v1876_v58, 0.0  ;;  %v1332_v3 = vmax.f32 %v2081_v59, 0.0  ;;  %v1106_v58 = vmax.f32 %v2001_v48, 0.0  ;;  %v1319_v59 = vmax.f32 %v2068_v49, 0.0  ;;  %v1985_v48 = vld [vmem:[%s2427_s25 + $0x6d8] sm:$0xff] }
  0x7b   : > { %777 = vmatprep.subr.mxu0 %v702_v5  ;;  %994 = vmatprep.subr.mxu1 %v915_v6  ;;  %v2079_v5 = vld [vmem:[%s2427_s25 + $0x950] sm:$0xff]  ;;  %v1118_v6 = vmax.f32 %v2013_v61, 0.0  ;;  %v2065_v61 = vld [vmem:[%s2427_s25 + $0x8e0] sm:$0xff]  ;;  %v2052_v49 = vld [vmem:[%s2427_s25 + $0x878] sm:$0xff] }
  0x7c   : > { %778 = vmatpush2.msra.mxu0 %v701_v8  ;;  %995 = vmatpush2.msra.mxu1 %v914_v9  ;;  %v2078_v8 = vld [vmem:[%s2427_s25 + $0x948] sm:$0xff]  ;;  %v1316_v7 = vmax.f32 %v2065_v61, 0.0  ;;  %v2103_v61 = vld [vmem:[%s2427_s25 + $0xa10] sm:$0xff] }
  0x7d   : > { %1836 = vmatprep.mubr.msk.f32.mxu1 %vm287_vm0, %v1832_v15  ;;  %779 = vmatprep.subr.mxu0 %v700_v12  ;;  %v1899_v9 = vld [vmem:[%s2539_s29 + $0x68] sm:$0xff]  ;;  %v2077_v12 = vld [vmem:[%s2427_s25 + $0x940] sm:$0xff]  ;;  %v1330_v15 = vmax.f32 %v2079_v5, 0.0  ;;  %v2063_v5 = vld [vmem:[%s2427_s25 + $0x8d0] sm:$0xff] }
  0x7e   : > { %996 = vmatprep.subr.mxu1 %v913_v16  ;;  %583 = vmatmul.mubr.f32.gmra.mxu1 %v1831_v19  ;;  %v2009_v16 = vld [vmem:[%s2427_s25 + $0x798] sm:$0xff]  ;;  %v1329_v19 = vmax.f32 %v2078_v8, 0.0  ;;  %v1995_v8 = vld [vmem:[%s2427_s25 + $0x728] sm:$0xff] }
  0x7f   : > { %780 = vmatpush2.msra.mxu0 %v699_v20  ;;  %997 = vmatpush2.msra.mxu1 %v912_v21  ;;  %v2008_v20 = vld [vmem:[%s2427_s25 + $0x790] sm:$0xff] }
  0x80   : > { %781 = vmatprep.subr.mxu0 %v698_v22  ;;  %998 = vmatprep.subr.mxu1 %v911_v23  ;;  %v2075_v21 = vld [vmem:[%s2427_s25 + $0x930] sm:$0xff]  ;;  %v1115_v22 = vmax.f32 %v2010_v11, 0.0  ;;  %v1328_v23 = vmax.f32 %v2077_v12, 0.0  ;;  %v1113_v30 = vmax.f32 %v2008_v20, 0.0  ;;  %v1994_v12 = vld [vmem:[%s2427_s25 + $0x720] sm:$0xff] }
  0x81   : > { %782 = vmatpush2.msra.mxu0 %v697_v26  ;;  %999 = vmatpush2.msra.mxu1 %v910_v27  ;;  %v1114_v26 = vmax.f32 %v2009_v16, 0.0  ;;  %v1327_v27 = vmax.f32 %v2076_v17, 0.0  ;;  %v1993_v16 = vld [vmem:[%s2427_s25 + $0x718] sm:$0xff]  ;;  %v1992_v20 = vld [vmem:[%s2427_s25 + $0x710] sm:$0xff] }
  0x82   : > { %1773 = vmatprep.mubr.msk.f32.mxu0 %vm287_vm0, %v284_v28  ;;  %1837 = vmatprep.mubr.msk.f32.mxu1 %vm287_vm0, %v1834_v31  ;;  %v2006_v28 = vld [vmem:[%s2427_s25 + $0x780] sm:$0xff]  ;;  %v1326_v31 = vmax.f32 %v2075_v21, 0.0  ;;  %v2060_v17 = vld [vmem:[%s2427_s25 + $0x8b8] sm:$0xff]  ;;  %v2059_v21 = vld [vmem:[%s2427_s25 + $0x8b0] sm:$0xff] }
  0x83   : > { %783 = vmatprep.subr.mxu0 %v696_v32  ;;  %1000 = vmatprep.subr.mxu1 %v909_v33  ;;  %v2005_v32 = vld [vmem:[%s2427_s25 + $0x778] sm:$0xff] }
  0x84   : > { %368 = vmatmul.mubr.f32.gmra.mxu0 %v283_v38  ;;  %589 = vmatmul.mubr.f32.gmra.mxu1 %v1833_v39  ;;  %v2072_v33 = vld [vmem:[%s2427_s25 + $0x918] sm:$0xff]  ;;  %v1111_v38 = vmax.f32 %v2006_v28, 0.0  ;;  %v1324_v39 = vmax.f32 %v2073_v29, 0.0  ;;  %v1110_v42 = vmax.f32 %v2005_v32, 0.0  ;;  %v1990_v28 = vld [vmem:[%s2427_s25 + $0x700] sm:$0xff] }
  0x85   : > { %784 = vmatpush2.msra.mxu0 %v695_v40  ;;  %1001 = vmatpush2.msra.mxu1 %v908_v41  ;;  %v2003_v40 = vld [vmem:[%s2427_s25 + $0x768] sm:$0xff]  ;;  %v2057_v29 = vld [vmem:[%s2427_s25 + $0x8a0] sm:$0xff]  ;;  %v1989_v32 = vld [vmem:[%s2427_s25 + $0x6f8] sm:$0xff] }
  0x86   : > { %785 = vmatprep.subr.mxu0 %v694_v43  ;;  %1002 = vmatprep.subr.mxu1 %v907_v44  ;;  %v2070_v41 = vld [vmem:[%s2427_s25 + $0x908] sm:$0xff]  ;;  %v1323_v43 = vmax.f32 %v2072_v33, 0.0  ;;  %v2002_v44 = vld [vmem:[%s2427_s25 + $0x760] sm:$0xff]  ;;  %v2056_v33 = vld [vmem:[%s2427_s25 + $0x898] sm:$0xff] }
  0x87   : > { %786 = vmatpush2.msra.mxu0 %v693_v46  ;;  %1003 = vmatpush2.msra.mxu1 %v906_v47  ;;  %v1109_v46 = vmax.f32 %v2004_v36, 0.0  ;;  %v1322_v47 = vmax.f32 %v2071_v37, 0.0  ;;  %v1321_v51 = vmax.f32 %v2070_v41, 0.0  ;;  %v1107_v54 = vmax.f32 %v2002_v44, 0.0  ;;  %v1988_v36 = vld [vmem:[%s2427_s25 + $0x6f0] sm:$0xff]  ;;  %v2054_v41 = vld [vmem:[%s2427_s25 + $0x888] sm:$0xff] }
  0x88   : > { %1774 = vmatprep.mubr.msk.f32.mxu0 %vm287_vm0, %v286_v52  ;;  %787 = vmatprep.subr.mxu0 %v692_v50  ;;  %v1108_v50 = vmax.f32 %v2003_v40, 0.0  ;;  %v2000_v52 = vld [vmem:[%s2427_s25 + $0x750] sm:$0xff]  ;;  %v1987_v40 = vld [vmem:[%s2427_s25 + $0x6e8] sm:$0xff]  ;;  %v1986_v44 = vld [vmem:[%s2427_s25 + $0x6e0] sm:$0xff] }
  0x89   : > { %1004 = vmatprep.subr.mxu1 %v905_v53  ;;  %374 = vmatmul.mubr.f32.gmra.mxu0 %v285_v55  ;;  %v2067_v53 = vld [vmem:[%s2427_s25 + $0x8f0] sm:$0xff]  ;;  %v1320_v55 = vmax.f32 %v2069_v45, 0.0  ;;  %v2053_v45 = vld [vmem:[%s2427_s25 + $0x880] sm:$0xff] }
  0x8a   : > { %788 = vmatpush2.msra.mxu0 %v691_v56  ;;  %1005 = vmatpush2.msra.mxu1 %v904_v57  ;;  %v1999_v56 = vld [vmem:[%s2427_s25 + $0x748] sm:$0xff]  ;;  %v2055_v37 = vld [vmem:[%s2427_s25 + $0x890] sm:$0xff] }
  0x8b   : > { %1973 = vmatprep.mubr.msk.f32.mxu1 %vm287_vm0, %v1968_v62  ;;  %789 = vmatprep.subr.mxu0 %v690_v60  ;;  %v2066_v57 = vld [vmem:[%s2427_s25 + $0x8e8] sm:$0xff]  ;;  %v1998_v60 = vld [vmem:[%s2427_s25 + $0x740] sm:$0xff]  ;;  %v1105_v62 = vmax.f32 %v2000_v52, 0.0  ;;  %v1984_v52 = vld [vmem:[%s2427_s25 + $0x6d0] sm:$0xff] }
  0x8c   : > { %1007 = vmatmul.mubr.f32.vlgmr.msra.gmra.mxu1 %v1967_v1  ;;  %1372 = vmatprep.subr.mxu1 %v1333_v63  ;;  %v1318_v63 = vmax.f32 %v2067_v53, 0.0  ;;  %v2064_v1 = vld [vmem:[%s2427_s25 + $0x8d8] sm:$0xff]  ;;  %v2051_v53 = vld [vmem:[%s2427_s25 + $0x870] sm:$0xff] }
  0x8d   : > { %790 = vmatpush2.msra.mxu0 %v689_v2  ;;  %1373 = vmatpush1.msra.mxu1 %v1332_v3  ;;  %v1104_v2 = vmax.f32 %v1999_v56, 0.0  ;;  %v1317_v3 = vmax.f32 %v2066_v57, 0.0  ;;  %v1315_v11 = vmax.f32 %v2064_v1, 0.0  ;;  %v1983_v56 = vld [vmem:[%s2427_s25 + $0x6c8] sm:$0xff]  ;;  %v2104_v57 = vld [vmem:[%s2427_s25 + $0xa18] sm:$0xff] }
  0x8e   : > { %1904 = vmatprep.mubr.msk.f32.mxu0 %vm287_vm0, %v1899_v9  ;;  %1157 = vmatprep.subr.mxu0 %v1118_v6  ;;  %v1103_v6 = vmax.f32 %v1998_v60, 0.0  ;;  %v2062_v9 = vld [vmem:[%s2427_s25 + $0x8c8] sm:$0xff]  ;;  %v1982_v60 = vld [vmem:[%s2427_s25 + $0x6c0] sm:$0xff] }
  0x8f   : > { %1374 = vmatprep.subr.mxu1 %v1331_v10  ;;  %792 = vmatmul.mubr.f32.vlgmr.msra.gmra.mxu0 %v1898_v13  ;;  %v1102_v10 = vmax.f32 %v1997_v0, 0.0  ;;  %v2061_v13 = vld [vmem:[%s2427_s25 + $0x8c0] sm:$0xff]  ;;  %v2035_v0 = vld [vmem:[%s2427_s25 + $0x868] sm:$0xff] }
  0x90   : > { %1158 = vmatpush1.msra.mxu0 %v1117_v14  ;;  %1375 = vmatpush1.msra.mxu1 %v1330_v15  ;;  %v1101_v14 = vmax.f32 %v1996_v4, 0.0  ;;  %v1314_v15 = vmax.f32 %v2063_v5, 0.0  ;;  %v2102_v1 = vld [vmem:[%s2427_s25 + $0xa08] sm:$0xff]  ;;  %v2034_v4 = vld [vmem:[%s2427_s25 + $0x860] sm:$0xff] }
  0x91   : > { %1159 = vmatprep.subr.mxu0 %v1116_v18  ;;  %1376 = vmatprep.subr.mxu1 %v1329_v19  ;;  %v1100_v18 = vmax.f32 %v1995_v8, 0.0  ;;  %v1313_v19 = vmax.f32 %v2062_v9, 0.0  ;;  %v2101_v5 = vld [vmem:[%s2427_s25 + $0xa00] sm:$0xff]  ;;  %v2033_v8 = vld [vmem:[%s2427_s25 + $0x858] sm:$0xff] }
  0x92   : > { %1160 = vmatpush1.msra.mxu0 %v1115_v22  ;;  %1377 = vmatpush1.msra.mxu1 %v1328_v23  ;;  %v1099_v22 = vmax.f32 %v1994_v12, 0.0  ;;  %v1312_v23 = vmax.f32 %v2061_v13, 0.0  ;;  %v2100_v9 = vld [vmem:[%s2427_s25 + $0x9f8] sm:$0xff]  ;;  %v2032_v12 = vld [vmem:[%s2427_s25 + $0x850] sm:$0xff] }
  0x93   : > { %1161 = vmatprep.subr.mxu0 %v1114_v26  ;;  %1378 = vmatprep.subr.mxu1 %v1327_v27  ;;  %v1098_v26 = vmax.f32 %v1993_v16, 0.0  ;;  %v1311_v27 = vmax.f32 %v2060_v17, 0.0  ;;  %v2099_v13 = vld [vmem:[%s2427_s25 + $0x9f0] sm:$0xff]  ;;  %v2031_v16 = vld [vmem:[%s2427_s25 + $0x848] sm:$0xff] }
  0x94   : > { %1162 = vmatpush1.msra.mxu0 %v1113_v30  ;;  %1379 = vmatpush1.msra.mxu1 %v1326_v31  ;;  %v1097_v30 = vmax.f32 %v1992_v20, 0.0  ;;  %v1310_v31 = vmax.f32 %v2059_v21, 0.0  ;;  %v2098_v17 = vld [vmem:[%s2427_s25 + $0x9e8] sm:$0xff]  ;;  %v2030_v20 = vld [vmem:[%s2427_s25 + $0x840] sm:$0xff] }
  0x95   : > { %1163 = vmatprep.subr.mxu0 %v1112_v34  ;;  %1380 = vmatprep.subr.mxu1 %v1325_v35  ;;  %v1096_v34 = vmax.f32 %v1991_v24, 0.0  ;;  %v1309_v35 = vmax.f32 %v2058_v25, 0.0  ;;  %v2097_v21 = vld [vmem:[%s2427_s25 + $0x9e0] sm:$0xff]  ;;  %v2029_v24 = vld [vmem:[%s2427_s25 + $0x838] sm:$0xff] }
  0x96   : > { %1164 = vmatpush1.msra.mxu0 %v1111_v38  ;;  %1381 = vmatpush1.msra.mxu1 %v1324_v39  ;;  %v1095_v38 = vmax.f32 %v1990_v28, 0.0  ;;  %v1308_v39 = vmax.f32 %v2057_v29, 0.0  ;;  %v2096_v25 = vld [vmem:[%s2427_s25 + $0x9d8] sm:$0xff]  ;;  %v2028_v28 = vld [vmem:[%s2427_s25 + $0x830] sm:$0xff] }
  0x97   : > { %1165 = vmatprep.subr.mxu0 %v1110_v42  ;;  %1382 = vmatprep.subr.mxu1 %v1323_v43  ;;  %v1094_v42 = vmax.f32 %v1989_v32, 0.0  ;;  %v1307_v43 = vmax.f32 %v2056_v33, 0.0  ;;  %v2095_v29 = vld [vmem:[%s2427_s25 + $0x9d0] sm:$0xff]  ;;  %v2027_v32 = vld [vmem:[%s2427_s25 + $0x828] sm:$0xff] }
  0x98   : > { %1166 = vmatpush1.msra.mxu0 %v1109_v46  ;;  %1383 = vmatpush1.msra.mxu1 %v1322_v47  ;;  %v1093_v46 = vmax.f32 %v1988_v36, 0.0  ;;  %v1306_v47 = vmax.f32 %v2055_v37, 0.0  ;;  %v2094_v33 = vld [vmem:[%s2427_s25 + $0x9c8] sm:$0xff]  ;;  %v2026_v36 = vld [vmem:[%s2427_s25 + $0x820] sm:$0xff] }
  0x99   : > { %1167 = vmatprep.subr.mxu0 %v1108_v50  ;;  %1384 = vmatprep.subr.mxu1 %v1321_v51  ;;  %v1092_v50 = vmax.f32 %v1987_v40, 0.0  ;;  %v1305_v51 = vmax.f32 %v2054_v41, 0.0  ;;  %v2093_v37 = vld [vmem:[%s2427_s25 + $0x9c0] sm:$0xff]  ;;  %v2025_v40 = vld [vmem:[%s2427_s25 + $0x818] sm:$0xff]  ;;  %v1132_v41 = vmax.f32 %v2027_v32, 0.0 }
  0x9a   : > { %1168 = vmatpush1.msra.mxu0 %v1107_v54  ;;  %1385 = vmatpush1.msra.mxu1 %v1320_v55  ;;  %v1091_v54 = vmax.f32 %v1986_v44, 0.0  ;;  %v1304_v55 = vmax.f32 %v2053_v45, 0.0  ;;  %v1131_v44 = vmax.f32 %v2026_v36, 0.0  ;;  %v1344_v45 = vmax.f32 %v2093_v37, 0.0  ;;  %v2105_v36 = vld [vmem:[%s2539_s29 + $0xf0] sm:$0xff] }
  0x9b   : > { %1169 = vmatprep.subr.mxu0 %v1106_v58  ;;  %1386 = vmatprep.subr.mxu1 %v1319_v59  ;;  %v1090_v58 = vmax.f32 %v1985_v48, 0.0  ;;  %v1303_v59 = vmax.f32 %v2052_v49, 0.0  ;;  %v1130_v48 = vmax.f32 %v2025_v40, 0.0  ;;  %v2023_v49 = vld [vmem:[%s2427_s25 + $0x808] sm:$0xff]  ;;  %v2147_v40 = vld [vmem:[%s2427_s25 + $0xaf8] sm:$0xff] }
  0x9c   : > { %1170 = vmatpush1.msra.mxu0 %v1105_v62  ;;  %1387 = vmatpush1.msra.mxu1 %v1318_v63  ;;  %v1089_v62 = vmax.f32 %v1984_v52, 0.0  ;;  %v1302_v63 = vmax.f32 %v2051_v53, 0.0  ;;  %v2022_v53 = vld [vmem:[%s2427_s25 + $0x800] sm:$0xff] }
  0x9d   : > { %1171 = vmatprep.subr.mxu0 %v1104_v2  ;;  %1388 = vmatprep.subr.mxu1 %v1317_v3  ;;  %v1088_v2 = vmax.f32 %v1983_v56, 0.0  ;;  %v1355_v3 = vmax.f32 %v2104_v57, 0.0 }
  0x9e   : > { %1172 = vmatpush1.msra.mxu0 %v1103_v6  ;;  %1389 = vmatpush1.msra.mxu1 %v1316_v7  ;;  %v1087_v6 = vmax.f32 %v1982_v60, 0.0  ;;  %v1354_v7 = vmax.f32 %v2103_v61, 0.0  ;;  %v2021_v60 = vld [vmem:[%s2427_s25 + $0x7f8] sm:$0xff] }
  0x9f   : > { %1173 = vmatprep.subr.mxu0 %v1102_v10  ;;  %1390 = vmatprep.subr.mxu1 %v1315_v11  ;;  %v1140_v10 = vmax.f32 %v2035_v0, 0.0  ;;  %v1353_v11 = vmax.f32 %v2102_v1, 0.0  ;;  %v2088_v61 = vld [vmem:[%s2427_s25 + $0x998] sm:$0xff]  ;;  %v2020_v1 = vld [vmem:[%s2427_s25 + $0x7f0] sm:$0xff] }
  0xa0   : > { %1174 = vmatpush1.msra.mxu0 %v1101_v14  ;;  %1391 = vmatpush1.msra.mxu1 %v1314_v15  ;;  %v1139_v14 = vmax.f32 %v2034_v4, 0.0  ;;  %v1352_v15 = vmax.f32 %v2101_v5, 0.0  ;;  %v1901_v0 = vld [vmem:[%s2539_s29 + $0x78] sm:$0xff]  ;;  %v1126_v4 = vmax.f32 %v2021_v60, 0.0  ;;  %v1339_v5 = vmax.f32 %v2088_v61, 0.0  ;;  %v2138_v60 = vld [vmem:[%s2427_s25 + $0xab0] sm:$0xff] }
  0xa1   : > { %1175 = vmatprep.subr.mxu0 %v1100_v18  ;;  %1392 = vmatprep.subr.mxu1 %v1313_v19  ;;  %v1138_v18 = vmax.f32 %v2033_v8, 0.0  ;;  %v1351_v19 = vmax.f32 %v2100_v9, 0.0  ;;  %v2018_v8 = vld [vmem:[%s2427_s25 + $0x7e0] sm:$0xff] }
  0xa2   : > { %1176 = vmatpush1.msra.mxu0 %v1099_v22  ;;  %1393 = vmatpush1.msra.mxu1 %v1312_v23  ;;  %v1137_v22 = vmax.f32 %v2032_v12, 0.0  ;;  %v1350_v23 = vmax.f32 %v2099_v13, 0.0  ;;  %v2085_v9 = vld [vmem:[%s2427_s25 + $0x980] sm:$0xff]  ;;  %v1125_v12 = vmax.f32 %v2020_v1, 0.0  ;;  %v1535_v1 = vmax.f32 %v2138_v60, 0.0 }
  0xa3   : > { %1177 = vmatprep.subr.mxu0 %v1098_v26  ;;  %1394 = vmatprep.subr.mxu1 %v1311_v27  ;;  %v1136_v26 = vmax.f32 %v2031_v16, 0.0  ;;  %v1349_v27 = vmax.f32 %v2098_v17, 0.0  ;;  %v2084_v17 = vld [vmem:[%s2427_s25 + $0x978] sm:$0xff]  ;;  %v2160_v60 = vld [vmem:[%s2427_s25 + $0xb60] sm:$0xff] }
  0xa4   : > { %1178 = vmatpush1.msra.mxu0 %v1097_v30  ;;  %1395 = vmatpush1.msra.mxu1 %v1310_v31  ;;  %v1135_v30 = vmax.f32 %v2030_v20, 0.0  ;;  %v1348_v31 = vmax.f32 %v2097_v21, 0.0  ;;  %v2016_v20 = vld [vmem:[%s2427_s25 + $0x7d0] sm:$0xff] }
  0xa5   : > { %1179 = vmatprep.subr.mxu0 %v1096_v34  ;;  %1396 = vmatprep.subr.mxu1 %v1309_v35  ;;  %v1134_v34 = vmax.f32 %v2029_v24, 0.0  ;;  %v1347_v35 = vmax.f32 %v2096_v25, 0.0  ;;  %v2083_v21 = vld [vmem:[%s2427_s25 + $0x970] sm:$0xff]  ;;  %v1903_v24 = vld [vmem:[%s2539_s29 + $0x88] sm:$0xff]  ;;  %v1335_v25 = vmax.f32 %v2084_v17, 0.0 }
  0xa6   : > { %1180 = vmatpush1.msra.mxu0 %v1095_v38  ;;  %1397 = vmatpush1.msra.mxu1 %v1308_v39  ;;  %v1133_v38 = vmax.f32 %v2028_v28, 0.0  ;;  %v1346_v39 = vmax.f32 %v2095_v29, 0.0  ;;  %v1121_v28 = vmax.f32 %v2016_v20, 0.0  ;;  %v1334_v29 = vmax.f32 %v2083_v21, 0.0  ;;  %v2126_v20 = vld [vmem:[%s2427_s25 + $0xa50] sm:$0xff] }
  0xa7   : > { %1181 = vmatprep.subr.mxu0 %v1094_v42  ;;  %1398 = vmatprep.subr.mxu1 %v1307_v43  ;;  %v1345_v42 = vmax.f32 %v2094_v33, 0.0  ;;  %v2092_v43 = vld [vmem:[%s2427_s25 + $0x9b8] sm:$0xff] }
  0xa8   : > { %1182 = vmatpush1.msra.mxu0 %v1093_v46  ;;  %1399 = vmatpush1.msra.mxu1 %v1306_v47  ;;  %v2024_v46 = vld [vmem:[%s2427_s25 + $0x810] sm:$0xff]  ;;  %v1343_v52 = vmax.f32 %v2092_v43, 0.0  ;;  %v2106_v33 = vld [vmem:[%s2539_s29 + $0xf8] sm:$0xff] }
  0xa9   : > { %1183 = vmatprep.subr.mxu0 %v1092_v50  ;;  %1400 = vmatprep.subr.mxu1 %v1305_v51  ;;  %v2091_v47 = vld [vmem:[%s2427_s25 + $0x9b0] sm:$0xff]  ;;  %v2090_v50 = vld [vmem:[%s2427_s25 + $0x9a8] sm:$0xff]  ;;  %v1129_v56 = vmax.f32 %v2024_v46, 0.0 }
  0xaa   : > { %1184 = vmatpush1.msra.mxu0 %v1091_v54  ;;  %1401 = vmatpush1.msra.mxu1 %v1304_v55  ;;  %v1970_v51 = vld [vmem:[%s2539_s29 + $0xa8] sm:$0xff]  ;;  %v2089_v54 = vld [vmem:[%s2427_s25 + $0x9a0] sm:$0xff]  ;;  %v1342_v57 = vmax.f32 %v2091_v47, 0.0  ;;  %v2146_v43 = vld [vmem:[%s2427_s25 + $0xaf0] sm:$0xff]  ;;  %v1544_v47 = vmax.f32 %v2147_v40, 0.0 }
  0xab   : > { %1185 = vmatprep.subr.mxu0 %v1090_v58  ;;  %1402 = vmatprep.subr.mxu1 %v1303_v59  ;;  %v1969_v55 = vld [vmem:[%s2539_s29 + $0xa0] sm:$0xff]  ;;  %v1128_v58 = vmax.f32 %v2023_v49, 0.0  ;;  %v1341_v59 = vmax.f32 %v2090_v50, 0.0  ;;  %v2145_v46 = vld [vmem:[%s2427_s25 + $0xae8] sm:$0xff]  ;;  %v1543_v49 = vmax.f32 %v2146_v43, 0.0  ;;  %v2143_v50 = vld [vmem:[%s2427_s25 + $0xad8] sm:$0xff] }
  0xac   : > { %1186 = vmatpush1.msra.mxu0 %v1089_v62  ;;  %1403 = vmatpush1.msra.mxu1 %v1302_v63  ;;  %v1127_v62 = vmax.f32 %v2022_v53, 0.0  ;;  %v1340_v63 = vmax.f32 %v2089_v54, 0.0  ;;  %v2141_v54 = vld [vmem:[%s2427_s25 + $0xac8] sm:$0xff]  ;;  %v2170_v40 = vld [vmem:[%s2427_s25 + $0xbb0] sm:$0xff] }
  0xad   : > { %1187 = vmatprep.subr.mxu0 %v1088_v2  ;;  %1414 = vmatprep.subr.mxu1 %v1355_v3  ;;  %v2087_v2 = vld [vmem:[%s2427_s25 + $0x990] sm:$0xff]  ;;  %v1972_v3 = vld [vmem:[%s2539_s29 + $0xb8] sm:$0xff] }
  0xae   : > { %1188 = vmatpush1.msra.mxu0 %v1087_v6  ;;  %1415 = vmatpush2.msra.mxu1 %v1354_v7  ;;  %v2019_v6 = vld [vmem:[%s2427_s25 + $0x7e8] sm:$0xff]  ;;  %v1338_v13 = vmax.f32 %v2087_v2, 0.0  ;;  %v2135_v2 = vld [vmem:[%s2427_s25 + $0xa98] sm:$0xff] }
  0xaf   : > { %1199 = vmatprep.subr.mxu0 %v1140_v10  ;;  %1416 = vmatprep.subr.mxu1 %v1353_v11  ;;  %v2086_v7 = vld [vmem:[%s2427_s25 + $0x988] sm:$0xff]  ;;  %v1900_v10 = vld [vmem:[%s2539_s29 + $0x70] sm:$0xff] }
  0xb0   : > { %1200 = vmatpush2.msra.mxu0 %v1139_v14  ;;  %1417 = vmatpush2.msra.mxu1 %v1352_v15  ;;  %v1971_v11 = vld [vmem:[%s2539_s29 + $0xb0] sm:$0xff]  ;;  %v2017_v14 = vld [vmem:[%s2427_s25 + $0x7d8] sm:$0xff]  ;;  %v1124_v15 = vmax.f32 %v2019_v6, 0.0  ;;  %v1337_v16 = vmax.f32 %v2086_v7, 0.0  ;;  %v2133_v6 = vld [vmem:[%s2427_s25 + $0xa88] sm:$0xff]  ;;  %v1532_v7 = vmax.f32 %v2135_v2, 0.0 }
  0xb1   : > { %1201 = vmatprep.subr.mxu0 %v1138_v18  ;;  %1418 = vmatprep.subr.mxu1 %v1351_v19  ;;  %v1123_v18 = vmax.f32 %v2018_v8, 0.0  ;;  %v1336_v19 = vmax.f32 %v2085_v9, 0.0  ;;  %v2132_v8 = vld [vmem:[%s2427_s25 + $0xa80] sm:$0xff]  ;;  %v1557_v2 = vmax.f32 %v2160_v60, 0.0 }
  0xb2   : > { %1202 = vmatpush2.msra.mxu0 %v1137_v22  ;;  %1419 = vmatpush2.msra.mxu1 %v1350_v23  ;;  %v1122_v22 = vmax.f32 %v2017_v14, 0.0  ;;  %v2015_v23 = vld [vmem:[%s2427_s25 + $0x7c8] sm:$0xff] }
  0xb3   : > { %1203 = vmatprep.subr.mxu0 %v1136_v26  ;;  %1420 = vmatprep.subr.mxu1 %v1349_v27  ;;  %v2151_v26 = vld [vmem:[%s2427_s25 + $0xb18] sm:$0xff]  ;;  %v1902_v27 = vld [vmem:[%s2539_s29 + $0x80] sm:$0xff]  ;;  %v1120_v32 = vmax.f32 %v2015_v23, 0.0  ;;  %v2129_v14 = vld [vmem:[%s2427_s25 + $0xa68] sm:$0xff] }
  0xb4   : > { %1204 = vmatpush2.msra.mxu0 %v1135_v30  ;;  %1421 = vmatpush2.msra.mxu1 %v1348_v31  ;;  %v2014_v30 = vld [vmem:[%s2427_s25 + $0x7c0] sm:$0xff]  ;;  %v2150_v31 = vld [vmem:[%s2427_s25 + $0xb10] sm:$0xff] }
  0xb5   : > { %1205 = vmatprep.subr.mxu0 %v1134_v34  ;;  %1422 = vmatprep.subr.mxu1 %v1347_v35  ;;  %v1548_v34 = vmax.f32 %v2151_v26, 0.0  ;;  %v2149_v35 = vld [vmem:[%s2427_s25 + $0xb08] sm:$0xff]  ;;  %v1119_v37 = vmax.f32 %v2014_v30, 0.0  ;;  %v2123_v26 = vld [vmem:[%s2427_s25 + $0xa38] sm:$0xff] }
  0xb6   : > { %1206 = vmatpush2.msra.mxu0 %v1133_v38  ;;  %1423 = vmatpush2.msra.mxu1 %v1346_v39  ;;  %v1547_v38 = vmax.f32 %v2150_v31, 0.0  ;;  %v2148_v39 = vld [vmem:[%s2427_s25 + $0xb00] sm:$0xff]  ;;  %v2121_v30 = vld [vmem:[%s2427_s25 + $0xa28] sm:$0xff]  ;;  %v1520_v31 = vmax.f32 %v2123_v26, 0.0 }
  0xb7   : > { %1207 = vmatprep.subr.mxu0 %v1132_v41  ;;  %1424 = vmatprep.subr.mxu1 %v1345_v42  ;;  %v2037_v41 = vld [vmem:[%s2539_s29 + $0xc8] sm:$0xff]  ;;  %v1546_v42 = vmax.f32 %v2149_v35, 0.0  ;;  %v1518_v35 = vmax.f32 %v2121_v30, 0.0 }
  0xb8   : > { %1208 = vmatpush2.msra.mxu0 %v1131_v44  ;;  %1425 = vmatpush2.msra.mxu1 %v1344_v45  ;;  %v2036_v44 = vld [vmem:[%s2539_s29 + $0xc0] sm:$0xff]  ;;  %v1545_v45 = vmax.f32 %v2148_v39, 0.0  ;;  %v2175_v26 = vld [vmem:[%s2539_s29 + $0x128] sm:$0xff] }
  0xb9   : > { %1974 = vmatprep.mubr.msk.f32.mxu1 %vm287_vm0, %v1970_v51  ;;  %1209 = vmatprep.subr.mxu0 %v1130_v48  ;;  %v2144_v48 = vld [vmem:[%s2427_s25 + $0xae0] sm:$0xff]  ;;  %v1542_v51 = vmax.f32 %v2145_v46, 0.0  ;;  %v2167_v46 = vld [vmem:[%s2427_s25 + $0xb98] sm:$0xff] }
  0xba   : > { %1426 = vmatprep.subr.mxu1 %v1343_v52  ;;  %1013 = vmatmul.mubr.f32.gmra.mxu1 %v1969_v55  ;;  %v2142_v52 = vld [vmem:[%s2427_s25 + $0xad0] sm:$0xff]  ;;  %v1541_v53 = vmax.f32 %v2144_v48, 0.0  ;;  %v1540_v55 = vmax.f32 %v2143_v50, 0.0  ;;  %v2165_v50 = vld [vmem:[%s2427_s25 + $0xb88] sm:$0xff] }
  0xbb   : > { %1210 = vmatpush2.msra.mxu0 %v1129_v56  ;;  %1427 = vmatpush2.msra.mxu1 %v1342_v57  ;;  %v2140_v56 = vld [vmem:[%s2427_s25 + $0xac0] sm:$0xff]  ;;  %v1539_v57 = vmax.f32 %v2142_v52, 0.0  ;;  %v2166_v48 = vld [vmem:[%s2427_s25 + $0xb90] sm:$0xff] }
  0xbc   : > { %1211 = vmatprep.subr.mxu0 %v1128_v58  ;;  %1428 = vmatprep.subr.mxu1 %v1341_v59  ;;  %v2139_v58 = vld [vmem:[%s2427_s25 + $0xab8] sm:$0xff]  ;;  %v1538_v59 = vmax.f32 %v2141_v54, 0.0  ;;  %v1537_v61 = vmax.f32 %v2140_v56, 0.0  ;;  %v2164_v52 = vld [vmem:[%s2427_s25 + $0xb80] sm:$0xff] }
  0xbd   : > { %1212 = vmatpush2.msra.mxu0 %v1127_v62  ;;  %1429 = vmatpush2.msra.mxu1 %v1340_v63  ;;  %v2137_v62 = vld [vmem:[%s2427_s25 + $0xaa8] sm:$0xff]  ;;  %v1536_v63 = vmax.f32 %v2139_v58, 0.0  ;;  %v2163_v54 = vld [vmem:[%s2427_s25 + $0xb78] sm:$0xff]  ;;  %v1561_v56 = vmax.f32 %v2164_v52, 0.0 }
  0xbe   : > { %1905 = vmatprep.mubr.msk.f32.mxu0 %vm287_vm0, %v1901_v0  ;;  %1975 = vmatprep.mubr.msk.f32.mxu1 %vm287_vm0, %v1972_v3  ;;  %v2136_v0 = vld [vmem:[%s2427_s25 + $0xaa0] sm:$0xff]  ;;  %v1534_v3 = vmax.f32 %v2137_v62, 0.0  ;;  %v1560_v58 = vmax.f32 %v2163_v54, 0.0 }
  0xbf   : > { %1213 = vmatprep.subr.mxu0 %v1126_v4  ;;  %1430 = vmatprep.subr.mxu1 %v1339_v5  ;;  %v2134_v4 = vld [vmem:[%s2427_s25 + $0xa90] sm:$0xff]  ;;  %v1533_v5 = vmax.f32 %v2136_v0, 0.0 }
  0xc0   : > { %798 = vmatmul.mubr.f32.gmra.mxu0 %v1900_v10  ;;  %1019 = vmatmul.mubr.f32.gmra.mxu1 %v1971_v11  ;;  %v1531_v9 = vmax.f32 %v2134_v4, 0.0  ;;  %v2131_v10 = vld [vmem:[%s2427_s25 + $0xa78] sm:$0xff]  ;;  %v1530_v11 = vmax.f32 %v2133_v6, 0.0 }
  0xc1   : > { %1214 = vmatpush2.msra.mxu0 %v1125_v12  ;;  %1431 = vmatpush2.msra.mxu1 %v1338_v13  ;;  %v2130_v12 = vld [vmem:[%s2427_s25 + $0xa70] sm:$0xff]  ;;  %v1529_v13 = vmax.f32 %v2132_v8, 0.0  ;;  %v2039_v6 = vld [vmem:[%s2539_s29 + $0xd8] sm:$0xff] }
  0xc2   : > { %1215 = vmatprep.subr.mxu0 %v1124_v15  ;;  %1432 = vmatprep.subr.mxu1 %v1337_v16  ;;  %v1528_v15 = vmax.f32 %v2131_v10, 0.0  ;;  %v2128_v16 = vld [vmem:[%s2427_s25 + $0xa60] sm:$0xff]  ;;  %v1527_v17 = vmax.f32 %v2130_v12, 0.0  ;;  %v2155_v10 = vld [vmem:[%s2427_s25 + $0xb38] sm:$0xff]  ;;  %v2109_v12 = vld [vmem:[%s2539_s29 + $0x110] sm:$0xff] }
  0xc3   : > { %1216 = vmatpush2.msra.mxu0 %v1123_v18  ;;  %1433 = vmatpush2.msra.mxu1 %v1336_v19  ;;  %v2127_v18 = vld [vmem:[%s2427_s25 + $0xa58] sm:$0xff]  ;;  %v1526_v19 = vmax.f32 %v2129_v14, 0.0  ;;  %v1525_v21 = vmax.f32 %v2128_v16, 0.0  ;;  %v1552_v16 = vmax.f32 %v2155_v10, 0.0 }
  0xc4   : > { %1906 = vmatprep.mubr.msk.f32.mxu0 %vm287_vm0, %v1903_v24  ;;  %1217 = vmatprep.subr.mxu0 %v1122_v22  ;;  %v2125_v22 = vld [vmem:[%s2427_s25 + $0xa48] sm:$0xff]  ;;  %v1524_v23 = vmax.f32 %v2127_v18, 0.0  ;;  %v2124_v24 = vld [vmem:[%s2427_s25 + $0xa40] sm:$0xff] }
  0xc5   : > { %1434 = vmatprep.subr.mxu1 %v1335_v25  ;;  %804 = vmatmul.mubr.f32.gmra.mxu0 %v1902_v27  ;;  %v1523_v25 = vmax.f32 %v2126_v20, 0.0  ;;  %v1522_v27 = vmax.f32 %v2125_v22, 0.0  ;;  %v2152_v18 = vld [vmem:[%s2427_s25 + $0xb20] sm:$0xff] }
  0xc6   : > { %1218 = vmatpush2.msra.mxu0 %v1121_v28  ;;  %1435 = vmatpush2.msra.mxu1 %v1334_v29  ;;  %v2122_v28 = vld [vmem:[%s2427_s25 + $0xa30] sm:$0xff]  ;;  %v1521_v29 = vmax.f32 %v2124_v24, 0.0  ;;  %v2177_v24 = vld [vmem:[%s2539_s29 + $0x138] sm:$0xff] }
  0xc7   : > { %2111 = vmatprep.mubr.msk.f32.mxu1 %vm287_vm0, %v2106_v33  ;;  %1219 = vmatprep.subr.mxu0 %v1120_v32  ;;  %v2120_v32 = vld [vmem:[%s2427_s25 + $0xa20] sm:$0xff]  ;;  %v1519_v33 = vmax.f32 %v2122_v28, 0.0 }
  0xc8   : > { %1437 = vmatmul.mubr.f32.vlgmr.msra.gmra.mxu1 %v2105_v36  ;;  %2192 = vmatprep.subr.mxu1 %v1548_v34  ;;  %v2172_v36 = vld [vmem:[%s2427_s25 + $0xbc0] sm:$0xff] }
  0xc9   : > { %1220 = vmatpush2.msra.mxu0 %v1119_v37  ;;  %2219 = vmatpush1.msra.mxu1 %v1547_v38  ;;  %v1517_v37 = vmax.f32 %v2120_v32, 0.0  ;;  %v2174_v28 = vld [vmem:[%s2539_s29 + $0x120] sm:$0xff] }
  0xca   : > { %2042 = vmatprep.mubr.msk.f32.mxu0 %vm287_vm0, %v2037_v41  ;;  %1587 = vmatprep.subr.mxu0 %v1548_v34  ;;  %v2173_v34 = vld [vmem:[%s2427_s25 + $0xbc8] sm:$0xff]  ;;  %v1569_v41 = vmax.f32 %v2172_v36, 0.0 }
  0xcb   : > { %2193 = vmatprep.subr.mxu1 %v1546_v42  ;;  %1222 = vmatmul.mubr.f32.vlgmr.msra.gmra.mxu0 %v2036_v44  ;;  %v1570_v39 = vmax.f32 %v2173_v34, 0.0  ;;  %v2168_v44 = vld [vmem:[%s2427_s25 + $0xba0] sm:$0xff] }
  0xcc   : > { %1588 = vmatpush1.msra.mxu0 %v1547_v38  ;;  %2220 = vmatpush1.msra.mxu1 %v1545_v45  ;;  %v2171_v38 = vld [vmem:[%s2427_s25 + $0xbb8] sm:$0xff] }
  0xcd   : > { %1589 = vmatprep.subr.mxu0 %v1546_v42  ;;  %2194 = vmatprep.subr.mxu1 %v1544_v47  ;;  %v2169_v42 = vld [vmem:[%s2427_s25 + $0xba8] sm:$0xff]  ;;  %v1568_v43 = vmax.f32 %v2171_v38, 0.0 }
  0xce   : > { %1590 = vmatpush1.msra.mxu0 %v1545_v45  ;;  %2221 = vmatpush1.msra.mxu1 %v1543_v49  ;;  %v1567_v45 = vmax.f32 %v2170_v40, 0.0 }
  0xcf   : > { %1591 = vmatprep.subr.mxu0 %v1544_v47  ;;  %2195 = vmatprep.subr.mxu1 %v1542_v51  ;;  %v1566_v47 = vmax.f32 %v2169_v42, 0.0 }
  0xd0   : > { %1592 = vmatpush1.msra.mxu0 %v1543_v49  ;;  %2222 = vmatpush1.msra.mxu1 %v1541_v53  ;;  %v1565_v49 = vmax.f32 %v2168_v44, 0.0 }
  0xd1   : > { %1593 = vmatprep.subr.mxu0 %v1542_v51  ;;  %2196 = vmatprep.subr.mxu1 %v1540_v55  ;;  %v1564_v51 = vmax.f32 %v2167_v46, 0.0 }
  0xd2   : > { %1594 = vmatpush1.msra.mxu0 %v1541_v53  ;;  %2223 = vmatpush1.msra.mxu1 %v1539_v57  ;;  %v1563_v53 = vmax.f32 %v2166_v48, 0.0 }
  0xd3   : > { %1595 = vmatprep.subr.mxu0 %v1540_v55  ;;  %2197 = vmatprep.subr.mxu1 %v1538_v59  ;;  %v1562_v55 = vmax.f32 %v2165_v50, 0.0 }
  0xd4   : > { %1596 = vmatpush1.msra.mxu0 %v1539_v57  ;;  %2224 = vmatpush1.msra.mxu1 %v1537_v61  ;;  %v2162_v57 = vld [vmem:[%s2427_s25 + $0xb70] sm:$0xff] }
  0xd5   : > { %1597 = vmatprep.subr.mxu0 %v1538_v59  ;;  %2198 = vmatprep.subr.mxu1 %v1536_v63  ;;  %v2161_v59 = vld [vmem:[%s2427_s25 + $0xb68] sm:$0xff]  ;;  %v1559_v62 = vmax.f32 %v2162_v57, 0.0 }
  0xd6   : > { %1598 = vmatpush1.msra.mxu0 %v1537_v61  ;;  %2225 = vmatpush1.msra.mxu1 %v1535_v1  ;;  %v2108_v61 = vld [vmem:[%s2539_s29 + $0x108] sm:$0xff]  ;;  %v1558_v0 = vmax.f32 %v2161_v59, 0.0 }
  0xd7   : > { %1599 = vmatprep.subr.mxu0 %v1536_v63  ;;  %2199 = vmatprep.subr.mxu1 %v1534_v3  ;;  %v2159_v63 = vld [vmem:[%s2427_s25 + $0xb58] sm:$0xff] }
  0xd8   : > { %1600 = vmatpush1.msra.mxu0 %v1535_v1  ;;  %2226 = vmatpush1.msra.mxu1 %v1533_v5  ;;  %v2107_v1 = vld [vmem:[%s2539_s29 + $0x100] sm:$0xff]  ;;  %v1556_v4 = vmax.f32 %v2159_v63, 0.0 }
  0xd9   : > { %1601 = vmatprep.subr.mxu0 %v1534_v3  ;;  %2200 = vmatprep.subr.mxu1 %v1532_v7  ;;  %v2158_v3 = vld [vmem:[%s2427_s25 + $0xb50] sm:$0xff] }
  0xda   : > { %1602 = vmatpush1.msra.mxu0 %v1533_v5  ;;  %2227 = vmatpush1.msra.mxu1 %v1531_v9  ;;  %v2157_v5 = vld [vmem:[%s2427_s25 + $0xb48] sm:$0xff]  ;;  %v1555_v8 = vmax.f32 %v2158_v3, 0.0 }
  0xdb   : > { %1603 = vmatprep.subr.mxu0 %v1532_v7  ;;  %2201 = vmatprep.subr.mxu1 %v1530_v11  ;;  %v2110_v7 = vld [vmem:[%s2539_s29 + $0x118] sm:$0xff] }
  0xdc   : > { %1604 = vmatpush1.msra.mxu0 %v1531_v9  ;;  %2228 = vmatpush1.msra.mxu1 %v1529_v13  ;;  %v2156_v9 = vld [vmem:[%s2427_s25 + $0xb40] sm:$0xff] }
  0xdd   : > { %1605 = vmatprep.subr.mxu0 %v1530_v11  ;;  %2202 = vmatprep.subr.mxu1 %v1528_v15  ;;  %v2038_v11 = vld [vmem:[%s2539_s29 + $0xd0] sm:$0xff]  ;;  %v1553_v14 = vmax.f32 %v2156_v9, 0.0 }
  0xde   : > { %1606 = vmatpush1.msra.mxu0 %v1529_v13  ;;  %2229 = vmatpush1.msra.mxu1 %v1527_v17  ;;  %v1554_v13 = vmax.f32 %v2157_v5, 0.0 }
  0xdf   : > { %1607 = vmatprep.subr.mxu0 %v1528_v15  ;;  %2203 = vmatprep.subr.mxu1 %v1526_v19  ;;  %v2154_v15 = vld [vmem:[%s2427_s25 + $0xb30] sm:$0xff] }
  0xe0   : > { %1608 = vmatpush1.msra.mxu0 %v1527_v17  ;;  %2230 = vmatpush1.msra.mxu1 %v1525_v21  ;;  %v2153_v17 = vld [vmem:[%s2427_s25 + $0xb28] sm:$0xff]  ;;  %v1551_v20 = vmax.f32 %v2154_v15, 0.0 }
  0xe1   : > { %1609 = vmatprep.subr.mxu0 %v1526_v19  ;;  %2204 = vmatprep.subr.mxu1 %v1524_v23  ;;  %v2041_v19 = vld [vmem:[%s2539_s29 + $0xe8] sm:$0xff]  ;;  %v1550_v22 = vmax.f32 %v2153_v17, 0.0 }
  0xe2   : > { %1610 = vmatpush1.msra.mxu0 %v1525_v21  ;;  %2231 = vmatpush1.msra.mxu1 %v1523_v25  ;;  %v2040_v21 = vld [vmem:[%s2539_s29 + $0xe0] sm:$0xff] }
  0xe3   : > { %1611 = vmatprep.subr.mxu0 %v1524_v23  ;;  %2205 = vmatprep.subr.mxu1 %v1522_v27  ;;  %v1549_v23 = vmax.f32 %v2152_v18, 0.0 }
  0xe4   : > { %1612 = vmatpush1.msra.mxu0 %v1523_v25  ;;  %2232 = vmatpush1.msra.mxu1 %v1521_v29  ;;  %v2176_v25 = vld [vmem:[%s2539_s29 + $0x130] sm:$0xff] }
  0xe5   : > { %1613 = vmatprep.subr.mxu0 %v1522_v27  ;;  %2206 = vmatprep.subr.mxu1 %v1520_v31  ;;  %v2179_v27 = vld [vmem:[%s2539_s29 + $0x148] sm:$0xff] }
  0xe6   : > { %1614 = vmatpush1.msra.mxu0 %v1521_v29  ;;  %2233 = vmatpush1.msra.mxu1 %v1519_v33  ;;  %v2178_v29 = vld [vmem:[%s2539_s29 + $0x140] sm:$0xff] }
  0xe7   : > { %1615 = vmatprep.subr.mxu0 %v1520_v31  ;;  %2207 = vmatprep.subr.mxu1 %v1518_v35 }
  0xe8   : > { %1616 = vmatpush1.msra.mxu0 %v1519_v33  ;;  %2234 = vmatpush1.msra.mxu1 %v1517_v37 }
  0xe9   : > { %1617 = vmatprep.subr.mxu0 %v1518_v35  ;;  %2208 = vmatprep.subr.mxu1 %v1570_v39 }
  0xea   : > { %1618 = vmatpush1.msra.mxu0 %v1517_v37  ;;  %2235 = vmatpush2.msra.mxu1 %v1569_v41 }
  0xeb   : > { %1629 = vmatprep.subr.mxu0 %v1570_v39  ;;  %2209 = vmatprep.subr.mxu1 %v1568_v43 }
  0xec   : > { %1630 = vmatpush2.msra.mxu0 %v1569_v41  ;;  %2236 = vmatpush2.msra.mxu1 %v1567_v45 }
  0xed   : > { %1631 = vmatprep.subr.mxu0 %v1568_v43  ;;  %2210 = vmatprep.subr.mxu1 %v1566_v47 }
  0xee   : > { %1632 = vmatpush2.msra.mxu0 %v1567_v45  ;;  %2237 = vmatpush2.msra.mxu1 %v1565_v49 }
  0xef   : > { %1633 = vmatprep.subr.mxu0 %v1566_v47  ;;  %2211 = vmatprep.subr.mxu1 %v1564_v51 }
  0xf0   : > { %1634 = vmatpush2.msra.mxu0 %v1565_v49  ;;  %2238 = vmatpush2.msra.mxu1 %v1563_v53 }
  0xf1   : > { %1635 = vmatprep.subr.mxu0 %v1564_v51  ;;  %2212 = vmatprep.subr.mxu1 %v1562_v55 }
  0xf2   : > { %1636 = vmatpush2.msra.mxu0 %v1563_v53  ;;  %2239 = vmatpush2.msra.mxu1 %v1561_v56 }
  0xf3   : > { %1637 = vmatprep.subr.mxu0 %v1562_v55  ;;  %2213 = vmatprep.subr.mxu1 %v1560_v58 }
  0xf4   : > { %2112 = vmatprep.mubr.msk.f32.mxu1 %vm287_vm0, %v2108_v61  ;;  %1638 = vmatpush2.msra.mxu0 %v1561_v56 }
  0xf5   : > { %2240 = vmatpush2.msra.mxu1 %v1559_v62  ;;  %1639 = vmatprep.subr.mxu0 %v1560_v58 }
  0xf6   : > { %1443 = vmatmul.mubr.f32.gmra.mxu1 %v2107_v1  ;;  %2214 = vmatprep.subr.mxu1 %v1558_v0 }
  0xf7   : > { %1640 = vmatpush2.msra.mxu0 %v1559_v62  ;;  %2241 = vmatpush2.msra.mxu1 %v1557_v2 }
  0xf8   : > { %1641 = vmatprep.subr.mxu0 %v1558_v0  ;;  %2215 = vmatprep.subr.mxu1 %v1556_v4 }
  0xf9   : > { %2043 = vmatprep.mubr.msk.f32.mxu0 %vm287_vm0, %v2039_v6  ;;  %2113 = vmatprep.mubr.msk.f32.mxu1 %vm287_vm0, %v2110_v7 }
  0xfa   : > { %1642 = vmatpush2.msra.mxu0 %v1557_v2  ;;  %2242 = vmatpush2.msra.mxu1 %v1555_v8 }
  0xfb   : > { %1228 = vmatmul.mubr.f32.gmra.mxu0 %v2038_v11  ;;  %1449 = vmatmul.mubr.f32.gmra.mxu1 %v2109_v12 }
  0xfc   : > { %1643 = vmatprep.subr.mxu0 %v1556_v4  ;;  %2216 = vmatprep.subr.mxu1 %v1554_v13 }
  0xfd   : > { %1644 = vmatpush2.msra.mxu0 %v1555_v8  ;;  %2243 = vmatpush2.msra.mxu1 %v1553_v14 }
  0xfe   : > { %1645 = vmatprep.subr.mxu0 %v1554_v13  ;;  %2217 = vmatprep.subr.mxu1 %v1552_v16 }
  0xff   : > { %2044 = vmatprep.mubr.msk.f32.mxu0 %vm287_vm0, %v2041_v19  ;;  %1646 = vmatpush2.msra.mxu0 %v1553_v14 }
 0x100   : > { %2244 = vmatpush2.msra.mxu1 %v1551_v20  ;;  %1234 = vmatmul.mubr.f32.gmra.mxu0 %v2040_v21 }
 0x101   : > { %1647 = vmatprep.subr.mxu0 %v1552_v16  ;;  %2218 = vmatprep.subr.mxu1 %v1550_v22 }
 0x102   : > { %1648 = vmatpush2.msra.mxu0 %v1551_v20  ;;  %2245 = vmatpush2.msra.mxu1 %v1549_v23 }
 0x103   : > { %2181 = vmatprep.mubr.msk.f32.mxu1 %vm287_vm0, %v2177_v24  ;;  %1649 = vmatprep.subr.mxu0 %v1550_v22 }
 0x104   : > { %1658 = vmatmul.mubr.f32.vlgmr.msra.gmra.mxu1 %v2176_v25  ;;  %1650 = vmatpush2.msra.mxu0 %v1549_v23 }
 0x105   : > { %2180 = vmatprep.mubr.msk.f32.mxu0 %vm287_vm0, %v2175_v26  ;;  %2182 = vmatprep.mubr.msk.f32.mxu1 %vm287_vm0, %v2179_v27 }
 0x106   : > { %1652 = vmatmul.mubr.f32.vlgmr.msra.gmra.mxu0 %v2174_v28 }
 0x108   : > { %1664 = vmatmul.mubr.f32.gmra.mxu1 %v2178_v29 }
 0x110   : > { %v578_v30 = vpop.f32.mrf.mxu1 }
 0x111   : > { %1838 = vst [vmem:[%s2879_s4 + $0x30] sm:$0xff] %v578_v30 }
 0x112   : > { %v580_v31 = vpop.f32.mrf.mxu1 }
 0x113   : > { %1839 = vst.msk [vmem:[%s2879_s4 + $0x38] sm:$0xff] %vm381_vm1, %v580_v31  ;;  %v363_v32 = vpop.f32.mrf.mxu0 }
 0x114   : > { %380 = vst [vmem:[%s2879_s4] sm:$0xff] %v363_v32 }
 0x115   : > { %v365_v33 = vpop.f32.mrf.mxu0 }
 0x116   : > { %382 = vst.msk [vmem:[%s2879_s4 + $0x8] sm:$0xff] %vm381_vm1, %v365_v33 }
 0x13e   : > { %v584_v34 = vpop.f32.mrf.mxu1 }
 0x13f   : > { %1840 = vst [vmem:[%s2879_s4 + $0x40] sm:$0xff] %v584_v34 }
 0x140   : > { %v586_v35 = vpop.f32.mrf.mxu1 }
 0x141   : > { %1841 = vst.msk [vmem:[%s2879_s4 + $0x48] sm:$0xff] %vm381_vm1, %v586_v35 }
 0x144   : > { %v369_v36 = vpop.f32.mrf.mxu0  ;;  %v590_v37 = vpop.f32.mrf.mxu1 }
 0x145   : > { %383 = vst [vmem:[%s2879_s4 + $0x10] sm:$0xff] %v369_v36  ;;  %1842 = vst [vmem:[%s2879_s4 + $0x50] sm:$0xff] %v590_v37 }
 0x146   : > { %v371_v38 = vpop.f32.mrf.mxu0  ;;  %v592_v39 = vpop.f32.mrf.mxu1 }
 0x147   : > { %384 = vst.msk [vmem:[%s2879_s4 + $0x18] sm:$0xff] %vm381_vm1, %v371_v38  ;;  %1843 = vst.msk [vmem:[%s2879_s4 + $0x58] sm:$0xff] %vm381_vm1, %v592_v39 }
 0x149   : > { %v375_v40 = vpop.f32.mrf.mxu0 }
 0x14a   : > { %385 = vst [vmem:[%s2879_s4 + $0x20] sm:$0xff] %v375_v40 }
 0x14b   : > { %v377_v41 = vpop.f32.mrf.mxu0 }
 0x14c   : > { %v1008_v42 = vpop.f32.mrf.mxu1  ;;  %386 = vst.msk [vmem:[%s2879_s4 + $0x28] sm:$0xff] %vm381_vm1, %v377_v41 }
 0x14d   : > { %1976 = vst [vmem:[%s2879_s4 + $0x90] sm:$0xff] %v1008_v42 }
 0x14e   : > { %v1010_v43 = vpop.f32.mrf.mxu1 }
 0x14f   : > { %1977 = vst.msk [vmem:[%s2879_s4 + $0x98] sm:$0xff] %vm381_vm1, %v1010_v43  ;;  %v793_v44 = vpop.f32.mrf.mxu0 }
 0x150   : > { %1907 = vst [vmem:[%s2879_s4 + $0x60] sm:$0xff] %v793_v44 }
 0x151   : > { %v795_v45 = vpop.f32.mrf.mxu0 }
 0x152   : > { %1908 = vst.msk [vmem:[%s2879_s4 + $0x68] sm:$0xff] %vm381_vm1, %v795_v45 }
 0x17a   : > { %v1014_v46 = vpop.f32.mrf.mxu1 }
 0x17b   : > { %1978 = vst [vmem:[%s2879_s4 + $0xa0] sm:$0xff] %v1014_v46 }
 0x17c   : > { %v1016_v47 = vpop.f32.mrf.mxu1 }
 0x17d   : > { %1979 = vst.msk [vmem:[%s2879_s4 + $0xa8] sm:$0xff] %vm381_vm1, %v1016_v47 }
 0x180   : > { %v799_v48 = vpop.f32.mrf.mxu0  ;;  %v1020_v49 = vpop.f32.mrf.mxu1 }
 0x181   : > { %1909 = vst [vmem:[%s2879_s4 + $0x70] sm:$0xff] %v799_v48  ;;  %1980 = vst [vmem:[%s2879_s4 + $0xb0] sm:$0xff] %v1020_v49 }
 0x182   : > { %v801_v50 = vpop.f32.mrf.mxu0  ;;  %v1022_v51 = vpop.f32.mrf.mxu1 }
 0x183   : > { %1910 = vst.msk [vmem:[%s2879_s4 + $0x78] sm:$0xff] %vm381_vm1, %v801_v50  ;;  %1981 = vst.msk [vmem:[%s2879_s4 + $0xb8] sm:$0xff] %vm381_vm1, %v1022_v51 }
 0x185   : > { %v805_v52 = vpop.f32.mrf.mxu0 }
 0x186   : > { %1911 = vst [vmem:[%s2879_s4 + $0x80] sm:$0xff] %v805_v52 }
 0x187   : > { %v807_v53 = vpop.f32.mrf.mxu0 }
 0x188   : > { %v1438_v54 = vpop.f32.mrf.mxu1  ;;  %1912 = vst.msk [vmem:[%s2879_s4 + $0x88] sm:$0xff] %vm381_vm1, %v807_v53 }
 0x189   : > { %2114 = vst [vmem:[%s2879_s4 + $0xf0] sm:$0xff] %v1438_v54 }
 0x18a   : > { %v1440_v55 = vpop.f32.mrf.mxu1 }
 0x18b   : > { %2115 = vst.msk [vmem:[%s2879_s4 + $0xf8] sm:$0xff] %vm381_vm1, %v1440_v55  ;;  %v1223_v56 = vpop.f32.mrf.mxu0 }
 0x18c   : > { %2045 = vst [vmem:[%s2879_s4 + $0xc0] sm:$0xff] %v1223_v56 }
 0x18d   : > { %v1225_v57 = vpop.f32.mrf.mxu0 }
 0x18e   : > { %2046 = vst.msk [vmem:[%s2879_s4 + $0xc8] sm:$0xff] %vm381_vm1, %v1225_v57 }
 0x1b6   : > { %v1444_v58 = vpop.f32.mrf.mxu1 }
 0x1b7   : > { %2116 = vst [vmem:[%s2879_s4 + $0x100] sm:$0xff] %v1444_v58 }
 0x1b8   : > { %v1446_v59 = vpop.f32.mrf.mxu1 }
 0x1b9   : > { %2117 = vst.msk [vmem:[%s2879_s4 + $0x108] sm:$0xff] %vm381_vm1, %v1446_v59 }
 0x1bb   : > { %v1229_v60 = vpop.f32.mrf.mxu0  ;;  %v1450_v61 = vpop.f32.mrf.mxu1 }
 0x1bc   : > { %2047 = vst [vmem:[%s2879_s4 + $0xd0] sm:$0xff] %v1229_v60  ;;  %2118 = vst [vmem:[%s2879_s4 + $0x110] sm:$0xff] %v1450_v61 }
 0x1bd   : > { %v1231_v62 = vpop.f32.mrf.mxu0  ;;  %v1452_v63 = vpop.f32.mrf.mxu1 }
 0x1be   : > { %2048 = vst.msk [vmem:[%s2879_s4 + $0xd8] sm:$0xff] %vm381_vm1, %v1231_v62  ;;  %2119 = vst.msk [vmem:[%s2879_s4 + $0x118] sm:$0xff] %vm381_vm1, %v1452_v63 }
 0x1c0   : > { %v1235_v0 = vpop.f32.mrf.mxu0 }
 0x1c1   : > { %2049 = vst [vmem:[%s2879_s4 + $0xe0] sm:$0xff] %v1235_v0 }
 0x1c2   : > { %v1237_v1 = vpop.f32.mrf.mxu0 }
 0x1c3   : > { %2050 = vst.msk [vmem:[%s2879_s4 + $0xe8] sm:$0xff] %vm381_vm1, %v1237_v1 }
 0x1c4   : > { %v1659_v2 = vpop.f32.mrf.mxu1 }
 0x1c5   : > { %2185 = vst [vmem:[%s2879_s4 + $0x130] sm:$0xff] %v1659_v2 }
 0x1c6   : > { %v1653_v3 = vpop.f32.mrf.mxu0  ;;  %v1661_v4 = vpop.f32.mrf.mxu1 }
 0x1c7   : > { %2183 = vst [vmem:[%s2879_s4 + $0x120] sm:$0xff] %v1653_v3  ;;  %2186 = vst.msk [vmem:[%s2879_s4 + $0x138] sm:$0xff] %vm381_vm1, %v1661_v4 }
 0x1c8   : > { %v1655_v5 = vpop.f32.mrf.mxu0  ;;  %v1665_v6 = vpop.f32.mrf.mxu1 }
 0x1c9   : > { %2184 = vst.msk [vmem:[%s2879_s4 + $0x128] sm:$0xff] %vm381_vm1, %v1655_v5  ;;  %2187 = vst [vmem:[%s2879_s4 + $0x140] sm:$0xff] %v1665_v6 }
 0x1ca   : > { %v1667_v7 = vpop.f32.mrf.mxu1 }
 0x1cb   : > { %2188 = vst.msk [vmem:[%s2879_s4 + $0x148] sm:$0xff] %vm381_vm1, %v1667_v7 }
 0x1cc   : > { %2305 = shalt.err (!%p2302_p3)
}
 0x1cd   : > { %s2306_s23 = scalar_lea.hbm %s2944_s14, 5376  ;;  %s2310_s26 = scalar_lea.hbm %s2997_s2, 10752 }
 0x1ce   : > { %p2307_p4 = scmp.ne.s32.totalorder %s2944_s14, %s2306_s23  ;;  %p2311_p9 = scmp.lt.s32.totalorder %s2944_s14, %s2997_s2 }
 0x1cf   : > { %p2312_p10 = scmp.lt.s32.totalorder %s2310_s26, %s2306_s23 }
 0x1d0   : > { %p2308_p7 = pnand %p2307_p4, %p2410_p5 }
 0x1d1   : > { %p2313_p11 = por %p2312_p10, %p2311_p9 }
 0x1d2   : > { %p2309_p8 = pneg %p2308_p7 }
 0x1d4   : > { %p2314_p12 = pnand %p2313_p11, %p2309_p8 }
 0x1d6   : > { %2317 = shalt.err (!%p2314_p12)
}
 0x1d7   : > { %s2355_s29 = smov 256   ;;  %s2356_s30 = smov 16  }
 0x1d8   : > { %2250 = dma.vmem_to_hbm [thread:$0]  (%p2410_p5), %s2946_s6, 5376, %s2944_s14, %s2955_s13, %s2355_s29, %s2355_s29, %s2356_s30  }
 0x1d9 PF: > { %p2257_p13 = scmp.ge.s32.totalorder %s2352_s12, 2  ;;  %s1707_s3 = sand.u32 1, %s2340_s9  }
 0x1da   : > { %s1708_s4 = scalar_lea.sflag [#allocation3], %s1707_s3 }
 0x1db   : > { %p2253_p0 = pnand %p2257_p13, %p2414_p6 }
 0x1dd   : > { %p2254_p1 = pneg %p2253_p0 }
 0x1df   : > { %2335 = dma.done.wait (%p2254_p1), %s1708_s4, 5376  }
 0x1e0   : > { %2337 = vsyncadd (%p2254_p1), %s1708_s4, 4294961920  ;;  %p12_p2 = scmp.ge.s32.totalorder %s2397_s15, 4   ;;  %s3000_s9 = smov %s2344_s10 }
 0x1e1   : > { %s3001_s10 = smov %s2348_s11  ;;  %s3002_s11 = smov %s2408_s18 }
 0x1e2   : > { %s3003_s12 = smov %s2397_s15  ;;  %14 = sbr.rel (!%p12_p2) target bundleno = 3 (0x3), region = 84 }
 0x1e7   :  { %1713 = vsyncpa [#allocation3], 1 }
 0x1e8   :  { %1715 = vsyncpa [#allocation3 + $0x1], 1 }

</bundles_post_ra>
